<compile_context>
chip_gen: v7x
topology: tpu7x:2x2x1
jax: 0.10.0
libtpu: 0.0.40
codegen_flags: <defaults>
</compile_context>

<pallas_src>
from functools import partial

import numpy as np
import jax
import jax.numpy as jnp
from jax.experimental import pallas as pl
from jax.experimental.pallas import tpu as pltpu

COMPUTE_DTYPE = jnp.bfloat16   # HBM / MXU operand dtype (accumulation is f32)


# ------------------------- static conv "gather" maps ------------------------ #

def _gather_matrices(h_in, w_in, k, stride, pad):
    """0/1 matrices S[t] (t = di*k + dj) such that S[t] @ x_flat selects, for
    every output position, the input pixel hit by conv tap (di, dj).
    x_flat is the NHWC activation flattened to [h_in*w_in, C]; out-of-bounds
    (zero-padding) rows are all-zero."""
    h_out = (h_in + 2 * pad - k) // stride + 1
    w_out = (w_in + 2 * pad - k) // stride + 1
    S = np.zeros((k * k, h_out * w_out, h_in * w_in), np.float32)
    for di in range(k):
        for dj in range(k):
            t = di * k + dj
            for oh in range(h_out):
                ih = oh * stride + di - pad
                if not (0 <= ih < h_in):
                    continue
                for ow in range(w_out):
                    iw = ow * stride + dj - pad
                    if not (0 <= iw < w_in):
                        continue
                    S[t, oh * w_out + ow, ih * w_in + iw] = 1.0
    return S, h_out, w_out


# ------------------------------ Pallas kernel ------------------------------ #

def _stem_kernel(*refs, n_stages, proj_has_gather):
    # refs = [x, (S, W, scale, shift) * n_stages, (S_proj?), W_proj, b, out]
    x_ref = refs[0]
    o_ref = refs[-1]
    idx = 1

    a = x_ref[...]                                      # [M_in, C_in] bf16
    for _ in range(n_stages):
        s_ref, w_ref, scale_ref, shift_ref = refs[idx:idx + 4]
        idx += 4
        n_taps = s_ref.shape[0]
        acc = None
        for t in range(n_taps):                         # unrolled (static)
            # Exact 0/1 gather of bf16 activations (f32 result is exact).
            g = jnp.dot(s_ref[t], a, preferred_element_type=jnp.float32)
            g = g.astype(COMPUTE_DTYPE)
            p = jnp.dot(g, w_ref[t], preferred_element_type=jnp.float32)
            acc = p if acc is None else acc + p
        y = acc * scale_ref[...] + shift_ref[...]       # folded BatchNorm (f32)
        a = jnp.maximum(y, 0.0).astype(COMPUTE_DTYPE)   # ReLU -> next stage

    if proj_has_gather:                                 # 1x1 conv with stride>1
        sp_ref = refs[idx]
        idx += 1
        a = jnp.dot(sp_ref[...], a,
                    preferred_element_type=jnp.float32).astype(COMPUTE_DTYPE)

    wp_ref, b_ref = refs[idx], refs[idx + 1]
    y = jnp.dot(a, wp_ref[...], preferred_element_type=jnp.float32) + b_ref[...]
    o_ref[...] = y.astype(o_ref.dtype)


# -------------------------------- wrapper ---------------------------------- #

def conv_embed_forward(x_nchw, params, strides):
    """ConvEmbed.forward: [B, Cin, H, W] -> [B, num_patches, C_last]."""
    B, c_in, H, W = x_nchw.shape
    x = jnp.transpose(x_nchw, (0, 2, 3, 1)).reshape(B, H * W, c_in)
    x = x.astype(COMPUTE_DTYPE)

    def const3(_b):
        return (0, 0, 0)

    def const2(_b):
        return (0, 0)

    operands = [x]
    in_specs = [pl.BlockSpec((None, H * W, c_in), lambda b: (b, 0, 0))]
    flops_per_image = 0
    h, w = H, W

    # 3x3 stride conv (no bias) + folded BatchNorm + ReLU stages.
    for (w_hwio, scale, shift), s in zip(params["stem3x3"], strides[:-1]):
        k, _, cin, cout = w_hwio.shape
        S_np, h_out, w_out = _gather_matrices(h, w, k, s, pad=1)
        m_in, m_out = h * w, h_out * w_out
        operands += [
            jnp.asarray(S_np, COMPUTE_DTYPE),                      # [k*k,Mo,Mi]
            jnp.asarray(w_hwio.reshape(k * k, cin, cout), COMPUTE_DTYPE),
            scale.reshape(1, cout).astype(jnp.float32),
            shift.reshape(1, cout).astype(jnp.float32),
        ]
        in_specs += [
            pl.BlockSpec((k * k, m_out, m_in), const3),
            pl.BlockSpec((k * k, cin, cout), const3),
            pl.BlockSpec((1, cout), const2),
            pl.BlockSpec((1, cout), const2),
        ]
        flops_per_image += 2 * k * k * (m_out * m_in * cin + m_out * cin * cout)
        h, w = h_out, w_out

    # Final 1x1 conv, stride strides[-1], with bias (no BN / ReLU).
    s_proj = strides[-1]
    w_proj, b_proj = params["proj"]
    _, _, c2, c3 = w_proj.shape
    proj_has_gather = s_proj != 1
    if proj_has_gather:
        Sp_np, h_out, w_out = _gather_matrices(h, w, 1, s_proj, pad=0)
        m_out = h_out * w_out
        operands.append(jnp.asarray(Sp_np[0], COMPUTE_DTYPE))
        in_specs.append(pl.BlockSpec((m_out, h * w), const2))
        flops_per_image += 2 * m_out * (h * w) * c2
        h, w = h_out, w_out
    m_out = h * w
    operands += [
        jnp.asarray(w_proj.reshape(c2, c3), COMPUTE_DTYPE),
        b_proj.reshape(1, c3).astype(jnp.float32),
    ]
    in_specs += [pl.BlockSpec((c2, c3), const2), pl.BlockSpec((1, c3), const2)]
    flops_per_image += 2 * m_out * c2 * c3

    out_shape = jax.ShapeDtypeStruct((B, m_out, c3), jnp.float32)
    out_spec = pl.BlockSpec((None, m_out, c3), lambda b: (b, 0, 0))

    bytes_accessed = sum(int(np.prod(o.shape)) * o.dtype.itemsize
                         for o in operands) + B * m_out * c3 * 4

    kernel = partial(_stem_kernel,
                     n_stages=len(params["stem3x3"]),
                     proj_has_gather=proj_has_gather)

    return pl.pallas_call(
        kernel,
        out_shape=out_shape,
        grid=(B,),
        in_specs=in_specs,
        out_specs=out_spec,
        compiler_params=pltpu.CompilerParams(
            dimension_semantics=("parallel",),
            vmem_limit_bytes=32 * 1024 * 1024),
        cost_estimate=pl.CostEstimate(
            flops=flops_per_image * B,
            transcendentals=0,
            bytes_accessed=bytes_accessed),
    )(*operands)


# ------------------------------ params / ref -------------------------------- #

def init_params(key, in_chans, channels):
    """Deterministic synthetic parameters matching nn.Module __init__ shapes."""
    chs = [in_chans] + list(channels)
    eps = 1e-5
    n3 = len(chs) - 2
    keys = jax.random.split(key, 4 * n3 + 2)
    ki = 0
    params = {"stem3x3": [], "proj": None}
    for i in range(n3):
        cin, cout = chs[i], chs[i + 1]
        # torch Conv2d weight is [Cout, Cin, kh, kw]; we store HWIO directly.
        w = 0.1 * jax.random.normal(keys[ki], (3, 3, cin, cout), jnp.float32); ki += 1
        gamma = 1.0 + 0.1 * jax.random.normal(keys[ki], (cout,), jnp.float32); ki += 1
        beta = 0.1 * jax.random.normal(keys[ki], (cout,), jnp.float32); ki += 1
        mean = 0.1 * jax.random.normal(keys[ki], (cout,), jnp.float32); ki += 1
        var = 0.9 * jnp.ones((cout,), jnp.float32)
        scale = gamma / jnp.sqrt(var + eps)
        shift = beta - mean * scale
        params["stem3x3"].append((w, scale, shift))
    cin, cout = chs[-2], chs[-1]
    w = 0.1 * jax.random.normal(keys[ki], (1, 1, cin, cout), jnp.float32); ki += 1
    b = 0.1 * jax.random.normal(keys[ki], (cout,), jnp.float32); ki += 1
    params["proj"] = (w, b)
    return params


def reference_forward(x_nchw, params, strides, compute_dtype=COMPUTE_DTYPE):
    """Pure-JAX reference (lax.conv) with the same precision policy as the
    kernel: bf16 conv operands, f32 accumulation, f32 BN affine / bias."""
    x = jnp.transpose(x_nchw, (0, 2, 3, 1))
    for (w_hwio, scale, shift), s in zip(params["stem3x3"], strides[:-1]):
        y = jax.lax.conv_general_dilated(
            x.astype(compute_dtype), w_hwio.astype(compute_dtype),
            (s, s), ((1, 1), (1, 1)),
            dimension_numbers=("NHWC", "HWIO", "NHWC"),
            preferred_element_type=jnp.float32)
        x = jnp.maximum(y * scale + shift, 0.0)
    w_hwio, b = params["proj"]
    y = jax.lax.conv_general_dilated(
        x.astype(compute_dtype), w_hwio.astype(compute_dtype),
        (strides[-1], strides[-1]), "VALID",
        dimension_numbers=("NHWC", "HWIO", "NHWC"),
        preferred_element_type=jnp.float32)
    y = y + b
    B, Ho, Wo, C = y.shape
    return y.reshape(B, Ho * Wo, C)


# ----------------------------------- main ----------------------------------- #

if __name__ == "__main__":
    key = jax.random.PRNGKey(0)
    k_in, k_p = jax.random.split(key)

    # Small ConvEmbed config: channels=[8,16,32], strides=(2,2,1),
    # img_size=(16,16), in_chans=4, batch_norm=True
    channels = [8, 16, 32]
    strides = (2, 2, 1)
    B, Cin, H, W = 2, 4, 16, 16

    x = jax.random.normal(k_in, (B, Cin, H, W), jnp.float32)
    params = init_params(k_p, Cin, channels)

    out = conv_embed_forward(x, params, strides)
    out = jax.block_until_ready(out)

    # shape check: num_patches = (img_size // prod(strides))**2
    stride_prod = int(np.prod(strides))
    num_patches = (H // stride_prod) ** 2
    assert out.shape == (B, num_patches, channels[-1]), out.shape

    # numerical check against the precision-matched pure-JAX reference
    ref = reference_forward(x, params, strides)
    max_err = float(jnp.max(jnp.abs(out - ref)))
    assert max_err < 2e-2, f"max abs error {max_err}"

    print("KERNEL_OK")
</pallas_src>

<mosaic_0001>
module attributes {stable_mosaic.version = 11 : i64} {
  func.func @_stem_kernel(%arg0: i32, %arg1: memref<1x256x4xbf16, #tpu.memory_space<vmem>>, %arg2: memref<9x64x256xbf16, #tpu.memory_space<vmem>>, %arg3: memref<9x4x8xbf16, #tpu.memory_space<vmem>>, %arg4: memref<1x8xf32, #tpu.memory_space<vmem>>, %arg5: memref<1x8xf32, #tpu.memory_space<vmem>>, %arg6: memref<9x16x64xbf16, #tpu.memory_space<vmem>>, %arg7: memref<9x8x16xbf16, #tpu.memory_space<vmem>>, %arg8: memref<1x16xf32, #tpu.memory_space<vmem>>, %arg9: memref<1x16xf32, #tpu.memory_space<vmem>>, %arg10: memref<16x32xbf16, #tpu.memory_space<vmem>>, %arg11: memref<1x32xf32, #tpu.memory_space<vmem>>, %arg12: memref<1x16x32xf32, #tpu.memory_space<vmem>>) attributes {dimension_semantics = [#tpu.dimension_semantics<parallel>], iteration_bounds = array<i64: 2>, scalar_prefetch = 0 : i64, scratch_operands = 0 : i64, tpu.core_type = #tpu.core_type<tc>, window_params = [{transform_indices = @transform_0, window_bounds = array<i64: 1, 256, 4>}, {pipeline_mode = #tpu.pipeline_mode<synchronous>, transform_indices = @transform_1, window_bounds = array<i64: 9, 64, 256>}, {pipeline_mode = #tpu.pipeline_mode<synchronous>, transform_indices = @transform_2, window_bounds = array<i64: 9, 4, 8>}, {pipeline_mode = #tpu.pipeline_mode<synchronous>, transform_indices = @transform_3, window_bounds = array<i64: 1, 8>}, {pipeline_mode = #tpu.pipeline_mode<synchronous>, transform_indices = @transform_4, window_bounds = array<i64: 1, 8>}, {pipeline_mode = #tpu.pipeline_mode<synchronous>, transform_indices = @transform_5, window_bounds = array<i64: 9, 16, 64>}, {pipeline_mode = #tpu.pipeline_mode<synchronous>, transform_indices = @transform_6, window_bounds = array<i64: 9, 8, 16>}, {pipeline_mode = #tpu.pipeline_mode<synchronous>, transform_indices = @transform_7, window_bounds = array<i64: 1, 16>}, {pipeline_mode = #tpu.pipeline_mode<synchronous>, transform_indices = @transform_8, window_bounds = array<i64: 1, 16>}, {pipeline_mode = #tpu.pipeline_mode<synchronous>, transform_indices = @transform_9, window_bounds = array<i64: 16, 32>}, {pipeline_mode = #tpu.pipeline_mode<synchronous>, transform_indices = @transform_10, window_bounds = array<i64: 1, 32>}, {transform_indices = @transform_11, window_bounds = array<i64: 1, 16, 32>}]} {
    %c0 = arith.constant 0 : index
    %c0_0 = arith.constant 0 : index
    %c0_1 = arith.constant 0 : index
    %0 = vector.load %arg1[%c0, %c0_0, %c0_1] : memref<1x256x4xbf16, #tpu.memory_space<vmem>>, vector<1x256x4xbf16>
    %1 = vector.shape_cast %0 : vector<1x256x4xbf16> to vector<256x4xbf16>
    %c0_2 = arith.constant 0 : index
    %c0_3 = arith.constant 0 : index
    %c0_4 = arith.constant 0 : index
    %2 = vector.load %arg2[%c0_2, %c0_3, %c0_4] : memref<9x64x256xbf16, #tpu.memory_space<vmem>>, vector<1x64x256xbf16>
    %3 = vector.shape_cast %2 : vector<1x64x256xbf16> to vector<64x256xbf16>
    %cst = arith.constant dense<0.000000e+00> : vector<64x4xf32>
    %4 = tpu.matmul %3, %1, %cst {dimension_numbers = #tpu.dot_dimension_numbers<[1], [0], [0], [1], [0, 0, 1, 1], [], []>} : vector<64x256xbf16>, vector<256x4xbf16>, vector<64x4xf32> -> vector<64x4xf32>
    %5 = arith.truncf %4 : vector<64x4xf32> to vector<64x4xbf16>
    %c0_5 = arith.constant 0 : index
    %c0_6 = arith.constant 0 : index
    %c0_7 = arith.constant 0 : index
    %6 = vector.load %arg3[%c0_5, %c0_6, %c0_7] : memref<9x4x8xbf16, #tpu.memory_space<vmem>>, vector<1x4x8xbf16>
    %7 = vector.shape_cast %6 : vector<1x4x8xbf16> to vector<4x8xbf16>
    %cst_8 = arith.constant dense<0.000000e+00> : vector<64x8xf32>
    %8 = tpu.matmul %5, %7, %cst_8 {dimension_numbers = #tpu.dot_dimension_numbers<[1], [0], [0], [1], [0, 0, 1, 1], [], []>} : vector<64x4xbf16>, vector<4x8xbf16>, vector<64x8xf32> -> vector<64x8xf32>
    %c1 = arith.constant 1 : index
    %c0_9 = arith.constant 0 : index
    %c0_10 = arith.constant 0 : index
    %9 = vector.load %arg2[%c1, %c0_9, %c0_10] : memref<9x64x256xbf16, #tpu.memory_space<vmem>>, vector<1x64x256xbf16>
    %10 = vector.shape_cast %9 : vector<1x64x256xbf16> to vector<64x256xbf16>
    %cst_11 = arith.constant dense<0.000000e+00> : vector<64x4xf32>
    %11 = tpu.matmul %10, %1, %cst_11 {dimension_numbers = #tpu.dot_dimension_numbers<[1], [0], [0], [1], [0, 0, 1, 1], [], []>} : vector<64x256xbf16>, vector<256x4xbf16>, vector<64x4xf32> -> vector<64x4xf32>
    %12 = arith.truncf %11 : vector<64x4xf32> to vector<64x4xbf16>
    %c1_12 = arith.constant 1 : index
    %c0_13 = arith.constant 0 : index
    %c0_14 = arith.constant 0 : index
    %13 = vector.load %arg3[%c1_12, %c0_13, %c0_14] : memref<9x4x8xbf16, #tpu.memory_space<vmem>>, vector<1x4x8xbf16>
    %14 = vector.shape_cast %13 : vector<1x4x8xbf16> to vector<4x8xbf16>
    %cst_15 = arith.constant dense<0.000000e+00> : vector<64x8xf32>
    %15 = tpu.matmul %12, %14, %cst_15 {dimension_numbers = #tpu.dot_dimension_numbers<[1], [0], [0], [1], [0, 0, 1, 1], [], []>} : vector<64x4xbf16>, vector<4x8xbf16>, vector<64x8xf32> -> vector<64x8xf32>
    %16 = arith.addf %8, %15 : vector<64x8xf32>
    %c2 = arith.constant 2 : index
    %c0_16 = arith.constant 0 : index
    %c0_17 = arith.constant 0 : index
    %17 = vector.load %arg2[%c2, %c0_16, %c0_17] : memref<9x64x256xbf16, #tpu.memory_space<vmem>>, vector<1x64x256xbf16>
    %18 = vector.shape_cast %17 : vector<1x64x256xbf16> to vector<64x256xbf16>
    %cst_18 = arith.constant dense<0.000000e+00> : vector<64x4xf32>
    %19 = tpu.matmul %18, %1, %cst_18 {dimension_numbers = #tpu.dot_dimension_numbers<[1], [0], [0], [1], [0, 0, 1, 1], [], []>} : vector<64x256xbf16>, vector<256x4xbf16>, vector<64x4xf32> -> vector<64x4xf32>
    %20 = arith.truncf %19 : vector<64x4xf32> to vector<64x4xbf16>
    %c2_19 = arith.constant 2 : index
    %c0_20 = arith.constant 0 : index
    %c0_21 = arith.constant 0 : index
    %21 = vector.load %arg3[%c2_19, %c0_20, %c0_21] : memref<9x4x8xbf16, #tpu.memory_space<vmem>>, vector<1x4x8xbf16>
    %22 = vector.shape_cast %21 : vector<1x4x8xbf16> to vector<4x8xbf16>
    %cst_22 = arith.constant dense<0.000000e+00> : vector<64x8xf32>
    %23 = tpu.matmul %20, %22, %cst_22 {dimension_numbers = #tpu.dot_dimension_numbers<[1], [0], [0], [1], [0, 0, 1, 1], [], []>} : vector<64x4xbf16>, vector<4x8xbf16>, vector<64x8xf32> -> vector<64x8xf32>
    %24 = arith.addf %16, %23 : vector<64x8xf32>
    %c3 = arith.constant 3 : index
    %c0_23 = arith.constant 0 : index
    %c0_24 = arith.constant 0 : index
    %25 = vector.load %arg2[%c3, %c0_23, %c0_24] : memref<9x64x256xbf16, #tpu.memory_space<vmem>>, vector<1x64x256xbf16>
    %26 = vector.shape_cast %25 : vector<1x64x256xbf16> to vector<64x256xbf16>
    %cst_25 = arith.constant dense<0.000000e+00> : vector<64x4xf32>
    %27 = tpu.matmul %26, %1, %cst_25 {dimension_numbers = #tpu.dot_dimension_numbers<[1], [0], [0], [1], [0, 0, 1, 1], [], []>} : vector<64x256xbf16>, vector<256x4xbf16>, vector<64x4xf32> -> vector<64x4xf32>
    %28 = arith.truncf %27 : vector<64x4xf32> to vector<64x4xbf16>
    %c3_26 = arith.constant 3 : index
    %c0_27 = arith.constant 0 : index
    %c0_28 = arith.constant 0 : index
    %29 = vector.load %arg3[%c3_26, %c0_27, %c0_28] : memref<9x4x8xbf16, #tpu.memory_space<vmem>>, vector<1x4x8xbf16>
    %30 = vector.shape_cast %29 : vector<1x4x8xbf16> to vector<4x8xbf16>
    %cst_29 = arith.constant dense<0.000000e+00> : vector<64x8xf32>
    %31 = tpu.matmul %28, %30, %cst_29 {dimension_numbers = #tpu.dot_dimension_numbers<[1], [0], [0], [1], [0, 0, 1, 1], [], []>} : vector<64x4xbf16>, vector<4x8xbf16>, vector<64x8xf32> -> vector<64x8xf32>
    %32 = arith.addf %24, %31 : vector<64x8xf32>
    %c4 = arith.constant 4 : index
    %c0_30 = arith.constant 0 : index
    %c0_31 = arith.constant 0 : index
    %33 = vector.load %arg2[%c4, %c0_30, %c0_31] : memref<9x64x256xbf16, #tpu.memory_space<vmem>>, vector<1x64x256xbf16>
    %34 = vector.shape_cast %33 : vector<1x64x256xbf16> to vector<64x256xbf16>
    %cst_32 = arith.constant dense<0.000000e+00> : vector<64x4xf32>
    %35 = tpu.matmul %34, %1, %cst_32 {dimension_numbers = #tpu.dot_dimension_numbers<[1], [0], [0], [1], [0, 0, 1, 1], [], []>} : vector<64x256xbf16>, vector<256x4xbf16>, vector<64x4xf32> -> vector<64x4xf32>
    %36 = arith.truncf %35 : vector<64x4xf32> to vector<64x4xbf16>
    %c4_33 = arith.constant 4 : index
    %c0_34 = arith.constant 0 : index
    %c0_35 = arith.constant 0 : index
    %37 = vector.load %arg3[%c4_33, %c0_34, %c0_35] : memref<9x4x8xbf16, #tpu.memory_space<vmem>>, vector<1x4x8xbf16>
    %38 = vector.shape_cast %37 : vector<1x4x8xbf16> to vector<4x8xbf16>
    %cst_36 = arith.constant dense<0.000000e+00> : vector<64x8xf32>
    %39 = tpu.matmul %36, %38, %cst_36 {dimension_numbers = #tpu.dot_dimension_numbers<[1], [0], [0], [1], [0, 0, 1, 1], [], []>} : vector<64x4xbf16>, vector<4x8xbf16>, vector<64x8xf32> -> vector<64x8xf32>
    %40 = arith.addf %32, %39 : vector<64x8xf32>
    %c5 = arith.constant 5 : index
    %c0_37 = arith.constant 0 : index
    %c0_38 = arith.constant 0 : index
    %41 = vector.load %arg2[%c5, %c0_37, %c0_38] : memref<9x64x256xbf16, #tpu.memory_space<vmem>>, vector<1x64x256xbf16>
    %42 = vector.shape_cast %41 : vector<1x64x256xbf16> to vector<64x256xbf16>
    %cst_39 = arith.constant dense<0.000000e+00> : vector<64x4xf32>
    %43 = tpu.matmul %42, %1, %cst_39 {dimension_numbers = #tpu.dot_dimension_numbers<[1], [0], [0], [1], [0, 0, 1, 1], [], []>} : vector<64x256xbf16>, vector<256x4xbf16>, vector<64x4xf32> -> vector<64x4xf32>
    %44 = arith.truncf %43 : vector<64x4xf32> to vector<64x4xbf16>
    %c5_40 = arith.constant 5 : index
    %c0_41 = arith.constant 0 : index
    %c0_42 = arith.constant 0 : index
    %45 = vector.load %arg3[%c5_40, %c0_41, %c0_42] : memref<9x4x8xbf16, #tpu.memory_space<vmem>>, vector<1x4x8xbf16>
    %46 = vector.shape_cast %45 : vector<1x4x8xbf16> to vector<4x8xbf16>
    %cst_43 = arith.constant dense<0.000000e+00> : vector<64x8xf32>
    %47 = tpu.matmul %44, %46, %cst_43 {dimension_numbers = #tpu.dot_dimension_numbers<[1], [0], [0], [1], [0, 0, 1, 1], [], []>} : vector<64x4xbf16>, vector<4x8xbf16>, vector<64x8xf32> -> vector<64x8xf32>
    %48 = arith.addf %40, %47 : vector<64x8xf32>
    %c6 = arith.constant 6 : index
    %c0_44 = arith.constant 0 : index
    %c0_45 = arith.constant 0 : index
    %49 = vector.load %arg2[%c6, %c0_44, %c0_45] : memref<9x64x256xbf16, #tpu.memory_space<vmem>>, vector<1x64x256xbf16>
    %50 = vector.shape_cast %49 : vector<1x64x256xbf16> to vector<64x256xbf16>
    %cst_46 = arith.constant dense<0.000000e+00> : vector<64x4xf32>
    %51 = tpu.matmul %50, %1, %cst_46 {dimension_numbers = #tpu.dot_dimension_numbers<[1], [0], [0], [1], [0, 0, 1, 1], [], []>} : vector<64x256xbf16>, vector<256x4xbf16>, vector<64x4xf32> -> vector<64x4xf32>
    %52 = arith.truncf %51 : vector<64x4xf32> to vector<64x4xbf16>
    %c6_47 = arith.constant 6 : index
    %c0_48 = arith.constant 0 : index
    %c0_49 = arith.constant 0 : index
    %53 = vector.load %arg3[%c6_47, %c0_48, %c0_49] : memref<9x4x8xbf16, #tpu.memory_space<vmem>>, vector<1x4x8xbf16>
    %54 = vector.shape_cast %53 : vector<1x4x8xbf16> to vector<4x8xbf16>
    %cst_50 = arith.constant dense<0.000000e+00> : vector<64x8xf32>
    %55 = tpu.matmul %52, %54, %cst_50 {dimension_numbers = #tpu.dot_dimension_numbers<[1], [0], [0], [1], [0, 0, 1, 1], [], []>} : vector<64x4xbf16>, vector<4x8xbf16>, vector<64x8xf32> -> vector<64x8xf32>
    %56 = arith.addf %48, %55 : vector<64x8xf32>
    %c7 = arith.constant 7 : index
    %c0_51 = arith.constant 0 : index
    %c0_52 = arith.constant 0 : index
    %57 = vector.load %arg2[%c7, %c0_51, %c0_52] : memref<9x64x256xbf16, #tpu.memory_space<vmem>>, vector<1x64x256xbf16>
    %58 = vector.shape_cast %57 : vector<1x64x256xbf16> to vector<64x256xbf16>
    %cst_53 = arith.constant dense<0.000000e+00> : vector<64x4xf32>
    %59 = tpu.matmul %58, %1, %cst_53 {dimension_numbers = #tpu.dot_dimension_numbers<[1], [0], [0], [1], [0, 0, 1, 1], [], []>} : vector<64x256xbf16>, vector<256x4xbf16>, vector<64x4xf32> -> vector<64x4xf32>
    %60 = arith.truncf %59 : vector<64x4xf32> to vector<64x4xbf16>
    %c7_54 = arith.constant 7 : index
    %c0_55 = arith.constant 0 : index
    %c0_56 = arith.constant 0 : index
    %61 = vector.load %arg3[%c7_54, %c0_55, %c0_56] : memref<9x4x8xbf16, #tpu.memory_space<vmem>>, vector<1x4x8xbf16>
    %62 = vector.shape_cast %61 : vector<1x4x8xbf16> to vector<4x8xbf16>
    %cst_57 = arith.constant dense<0.000000e+00> : vector<64x8xf32>
    %63 = tpu.matmul %60, %62, %cst_57 {dimension_numbers = #tpu.dot_dimension_numbers<[1], [0], [0], [1], [0, 0, 1, 1], [], []>} : vector<64x4xbf16>, vector<4x8xbf16>, vector<64x8xf32> -> vector<64x8xf32>
    %64 = arith.addf %56, %63 : vector<64x8xf32>
    %c8 = arith.constant 8 : index
    %c0_58 = arith.constant 0 : index
    %c0_59 = arith.constant 0 : index
    %65 = vector.load %arg2[%c8, %c0_58, %c0_59] : memref<9x64x256xbf16, #tpu.memory_space<vmem>>, vector<1x64x256xbf16>
    %66 = vector.shape_cast %65 : vector<1x64x256xbf16> to vector<64x256xbf16>
    %cst_60 = arith.constant dense<0.000000e+00> : vector<64x4xf32>
    %67 = tpu.matmul %66, %1, %cst_60 {dimension_numbers = #tpu.dot_dimension_numbers<[1], [0], [0], [1], [0, 0, 1, 1], [], []>} : vector<64x256xbf16>, vector<256x4xbf16>, vector<64x4xf32> -> vector<64x4xf32>
    %68 = arith.truncf %67 : vector<64x4xf32> to vector<64x4xbf16>
    %c8_61 = arith.constant 8 : index
    %c0_62 = arith.constant 0 : index
    %c0_63 = arith.constant 0 : index
    %69 = vector.load %arg3[%c8_61, %c0_62, %c0_63] : memref<9x4x8xbf16, #tpu.memory_space<vmem>>, vector<1x4x8xbf16>
    %70 = vector.shape_cast %69 : vector<1x4x8xbf16> to vector<4x8xbf16>
    %cst_64 = arith.constant dense<0.000000e+00> : vector<64x8xf32>
    %71 = tpu.matmul %68, %70, %cst_64 {dimension_numbers = #tpu.dot_dimension_numbers<[1], [0], [0], [1], [0, 0, 1, 1], [], []>} : vector<64x4xbf16>, vector<4x8xbf16>, vector<64x8xf32> -> vector<64x8xf32>
    %72 = arith.addf %64, %71 : vector<64x8xf32>
    %c0_65 = arith.constant 0 : index
    %c0_66 = arith.constant 0 : index
    %73 = vector.load %arg4[%c0_65, %c0_66] : memref<1x8xf32, #tpu.memory_space<vmem>>, vector<1x8xf32>
    %74 = vector.broadcast %73 : vector<1x8xf32> to vector<64x8xf32>
    %75 = arith.mulf %72, %74 : vector<64x8xf32>
    %c0_67 = arith.constant 0 : index
    %c0_68 = arith.constant 0 : index
    %76 = vector.load %arg5[%c0_67, %c0_68] : memref<1x8xf32, #tpu.memory_space<vmem>>, vector<1x8xf32>
    %77 = vector.broadcast %76 : vector<1x8xf32> to vector<64x8xf32>
    %78 = arith.addf %75, %77 : vector<64x8xf32>
    %cst_69 = arith.constant 0.000000e+00 : f32
    %79 = vector.broadcast %cst_69 : f32 to vector<64x8xf32>
    %80 = arith.maximumf %78, %79 : vector<64x8xf32>
    %81 = arith.truncf %80 : vector<64x8xf32> to vector<64x8xbf16>
    %c0_70 = arith.constant 0 : index
    %c0_71 = arith.constant 0 : index
    %c0_72 = arith.constant 0 : index
    %82 = vector.load %arg6[%c0_70, %c0_71, %c0_72] : memref<9x16x64xbf16, #tpu.memory_space<vmem>>, vector<1x16x64xbf16>
    %83 = vector.shape_cast %82 : vector<1x16x64xbf16> to vector<16x64xbf16>
    %cst_73 = arith.constant dense<0.000000e+00> : vector<16x8xf32>
    %84 = tpu.matmul %83, %81, %cst_73 {dimension_numbers = #tpu.dot_dimension_numbers<[1], [0], [0], [1], [0, 0, 1, 1], [], []>} : vector<16x64xbf16>, vector<64x8xbf16>, vector<16x8xf32> -> vector<16x8xf32>
    %85 = arith.truncf %84 : vector<16x8xf32> to vector<16x8xbf16>
    %c0_74 = arith.constant 0 : index
    %c0_75 = arith.constant 0 : index
    %c0_76 = arith.constant 0 : index
    %86 = vector.load %arg7[%c0_74, %c0_75, %c0_76] : memref<9x8x16xbf16, #tpu.memory_space<vmem>>, vector<1x8x16xbf16>
    %87 = vector.shape_cast %86 : vector<1x8x16xbf16> to vector<8x16xbf16>
    %cst_77 = arith.constant dense<0.000000e+00> : vector<16x16xf32>
    %88 = tpu.matmul %85, %87, %cst_77 {dimension_numbers = #tpu.dot_dimension_numbers<[1], [0], [0], [1], [0, 0, 1, 1], [], []>} : vector<16x8xbf16>, vector<8x16xbf16>, vector<16x16xf32> -> vector<16x16xf32>
    %c1_78 = arith.constant 1 : index
    %c0_79 = arith.constant 0 : index
    %c0_80 = arith.constant 0 : index
    %89 = vector.load %arg6[%c1_78, %c0_79, %c0_80] : memref<9x16x64xbf16, #tpu.memory_space<vmem>>, vector<1x16x64xbf16>
    %90 = vector.shape_cast %89 : vector<1x16x64xbf16> to vector<16x64xbf16>
    %cst_81 = arith.constant dense<0.000000e+00> : vector<16x8xf32>
    %91 = tpu.matmul %90, %81, %cst_81 {dimension_numbers = #tpu.dot_dimension_numbers<[1], [0], [0], [1], [0, 0, 1, 1], [], []>} : vector<16x64xbf16>, vector<64x8xbf16>, vector<16x8xf32> -> vector<16x8xf32>
    %92 = arith.truncf %91 : vector<16x8xf32> to vector<16x8xbf16>
    %c1_82 = arith.constant 1 : index
    %c0_83 = arith.constant 0 : index
    %c0_84 = arith.constant 0 : index
    %93 = vector.load %arg7[%c1_82, %c0_83, %c0_84] : memref<9x8x16xbf16, #tpu.memory_space<vmem>>, vector<1x8x16xbf16>
    %94 = vector.shape_cast %93 : vector<1x8x16xbf16> to vector<8x16xbf16>
    %cst_85 = arith.constant dense<0.000000e+00> : vector<16x16xf32>
    %95 = tpu.matmul %92, %94, %cst_85 {dimension_numbers = #tpu.dot_dimension_numbers<[1], [0], [0], [1], [0, 0, 1, 1], [], []>} : vector<16x8xbf16>, vector<8x16xbf16>, vector<16x16xf32> -> vector<16x16xf32>
    %96 = arith.addf %88, %95 : vector<16x16xf32>
    %c2_86 = arith.constant 2 : index
    %c0_87 = arith.constant 0 : index
    %c0_88 = arith.constant 0 : index
    %97 = vector.load %arg6[%c2_86, %c0_87, %c0_88] : memref<9x16x64xbf16, #tpu.memory_space<vmem>>, vector<1x16x64xbf16>
    %98 = vector.shape_cast %97 : vector<1x16x64xbf16> to vector<16x64xbf16>
    %cst_89 = arith.constant dense<0.000000e+00> : vector<16x8xf32>
    %99 = tpu.matmul %98, %81, %cst_89 {dimension_numbers = #tpu.dot_dimension_numbers<[1], [0], [0], [1], [0, 0, 1, 1], [], []>} : vector<16x64xbf16>, vector<64x8xbf16>, vector<16x8xf32> -> vector<16x8xf32>
    %100 = arith.truncf %99 : vector<16x8xf32> to vector<16x8xbf16>
    %c2_90 = arith.constant 2 : index
    %c0_91 = arith.constant 0 : index
    %c0_92 = arith.constant 0 : index
    %101 = vector.load %arg7[%c2_90, %c0_91, %c0_92] : memref<9x8x16xbf16, #tpu.memory_space<vmem>>, vector<1x8x16xbf16>
    %102 = vector.shape_cast %101 : vector<1x8x16xbf16> to vector<8x16xbf16>
    %cst_93 = arith.constant dense<0.000000e+00> : vector<16x16xf32>
    %103 = tpu.matmul %100, %102, %cst_93 {dimension_numbers = #tpu.dot_dimension_numbers<[1], [0], [0], [1], [0, 0, 1, 1], [], []>} : vector<16x8xbf16>, vector<8x16xbf16>, vector<16x16xf32> -> vector<16x16xf32>
    %104 = arith.addf %96, %103 : vector<16x16xf32>
    %c3_94 = arith.constant 3 : index
    %c0_95 = arith.constant 0 : index
    %c0_96 = arith.constant 0 : index
    %105 = vector.load %arg6[%c3_94, %c0_95, %c0_96] : memref<9x16x64xbf16, #tpu.memory_space<vmem>>, vector<1x16x64xbf16>
    %106 = vector.shape_cast %105 : vector<1x16x64xbf16> to vector<16x64xbf16>
    %cst_97 = arith.constant dense<0.000000e+00> : vector<16x8xf32>
    %107 = tpu.matmul %106, %81, %cst_97 {dimension_numbers = #tpu.dot_dimension_numbers<[1], [0], [0], [1], [0, 0, 1, 1], [], []>} : vector<16x64xbf16>, vector<64x8xbf16>, vector<16x8xf32> -> vector<16x8xf32>
    %108 = arith.truncf %107 : vector<16x8xf32> to vector<16x8xbf16>
    %c3_98 = arith.constant 3 : index
    %c0_99 = arith.constant 0 : index
    %c0_100 = arith.constant 0 : index
    %109 = vector.load %arg7[%c3_98, %c0_99, %c0_100] : memref<9x8x16xbf16, #tpu.memory_space<vmem>>, vector<1x8x16xbf16>
    %110 = vector.shape_cast %109 : vector<1x8x16xbf16> to vector<8x16xbf16>
    %cst_101 = arith.constant dense<0.000000e+00> : vector<16x16xf32>
    %111 = tpu.matmul %108, %110, %cst_101 {dimension_numbers = #tpu.dot_dimension_numbers<[1], [0], [0], [1], [0, 0, 1, 1], [], []>} : vector<16x8xbf16>, vector<8x16xbf16>, vector<16x16xf32> -> vector<16x16xf32>
    %112 = arith.addf %104, %111 : vector<16x16xf32>
    %c4_102 = arith.constant 4 : index
    %c0_103 = arith.constant 0 : index
    %c0_104 = arith.constant 0 : index
    %113 = vector.load %arg6[%c4_102, %c0_103, %c0_104] : memref<9x16x64xbf16, #tpu.memory_space<vmem>>, vector<1x16x64xbf16>
    %114 = vector.shape_cast %113 : vector<1x16x64xbf16> to vector<16x64xbf16>
    %cst_105 = arith.constant dense<0.000000e+00> : vector<16x8xf32>
    %115 = tpu.matmul %114, %81, %cst_105 {dimension_numbers = #tpu.dot_dimension_numbers<[1], [0], [0], [1], [0, 0, 1, 1], [], []>} : vector<16x64xbf16>, vector<64x8xbf16>, vector<16x8xf32> -> vector<16x8xf32>
    %116 = arith.truncf %115 : vector<16x8xf32> to vector<16x8xbf16>
    %c4_106 = arith.constant 4 : index
    %c0_107 = arith.constant 0 : index
    %c0_108 = arith.constant 0 : index
    %117 = vector.load %arg7[%c4_106, %c0_107, %c0_108] : memref<9x8x16xbf16, #tpu.memory_space<vmem>>, vector<1x8x16xbf16>
    %118 = vector.shape_cast %117 : vector<1x8x16xbf16> to vector<8x16xbf16>
    %cst_109 = arith.constant dense<0.000000e+00> : vector<16x16xf32>
    %119 = tpu.matmul %116, %118, %cst_109 {dimension_numbers = #tpu.dot_dimension_numbers<[1], [0], [0], [1], [0, 0, 1, 1], [], []>} : vector<16x8xbf16>, vector<8x16xbf16>, vector<16x16xf32> -> vector<16x16xf32>
    %120 = arith.addf %112, %119 : vector<16x16xf32>
    %c5_110 = arith.constant 5 : index
    %c0_111 = arith.constant 0 : index
    %c0_112 = arith.constant 0 : index
    %121 = vector.load %arg6[%c5_110, %c0_111, %c0_112] : memref<9x16x64xbf16, #tpu.memory_space<vmem>>, vector<1x16x64xbf16>
    %122 = vector.shape_cast %121 : vector<1x16x64xbf16> to vector<16x64xbf16>
    %cst_113 = arith.constant dense<0.000000e+00> : vector<16x8xf32>
    %123 = tpu.matmul %122, %81, %cst_113 {dimension_numbers = #tpu.dot_dimension_numbers<[1], [0], [0], [1], [0, 0, 1, 1], [], []>} : vector<16x64xbf16>, vector<64x8xbf16>, vector<16x8xf32> -> vector<16x8xf32>
    %124 = arith.truncf %123 : vector<16x8xf32> to vector<16x8xbf16>
    %c5_114 = arith.constant 5 : index
    %c0_115 = arith.constant 0 : index
    %c0_116 = arith.constant 0 : index
    %125 = vector.load %arg7[%c5_114, %c0_115, %c0_116] : memref<9x8x16xbf16, #tpu.memory_space<vmem>>, vector<1x8x16xbf16>
    %126 = vector.shape_cast %125 : vector<1x8x16xbf16> to vector<8x16xbf16>
    %cst_117 = arith.constant dense<0.000000e+00> : vector<16x16xf32>
    %127 = tpu.matmul %124, %126, %cst_117 {dimension_numbers = #tpu.dot_dimension_numbers<[1], [0], [0], [1], [0, 0, 1, 1], [], []>} : vector<16x8xbf16>, vector<8x16xbf16>, vector<16x16xf32> -> vector<16x16xf32>
    %128 = arith.addf %120, %127 : vector<16x16xf32>
    %c6_118 = arith.constant 6 : index
    %c0_119 = arith.constant 0 : index
    %c0_120 = arith.constant 0 : index
    %129 = vector.load %arg6[%c6_118, %c0_119, %c0_120] : memref<9x16x64xbf16, #tpu.memory_space<vmem>>, vector<1x16x64xbf16>
    %130 = vector.shape_cast %129 : vector<1x16x64xbf16> to vector<16x64xbf16>
    %cst_121 = arith.constant dense<0.000000e+00> : vector<16x8xf32>
    %131 = tpu.matmul %130, %81, %cst_121 {dimension_numbers = #tpu.dot_dimension_numbers<[1], [0], [0], [1], [0, 0, 1, 1], [], []>} : vector<16x64xbf16>, vector<64x8xbf16>, vector<16x8xf32> -> vector<16x8xf32>
    %132 = arith.truncf %131 : vector<16x8xf32> to vector<16x8xbf16>
    %c6_122 = arith.constant 6 : index
    %c0_123 = arith.constant 0 : index
    %c0_124 = arith.constant 0 : index
    %133 = vector.load %arg7[%c6_122, %c0_123, %c0_124] : memref<9x8x16xbf16, #tpu.memory_space<vmem>>, vector<1x8x16xbf16>
    %134 = vector.shape_cast %133 : vector<1x8x16xbf16> to vector<8x16xbf16>
    %cst_125 = arith.constant dense<0.000000e+00> : vector<16x16xf32>
    %135 = tpu.matmul %132, %134, %cst_125 {dimension_numbers = #tpu.dot_dimension_numbers<[1], [0], [0], [1], [0, 0, 1, 1], [], []>} : vector<16x8xbf16>, vector<8x16xbf16>, vector<16x16xf32> -> vector<16x16xf32>
    %136 = arith.addf %128, %135 : vector<16x16xf32>
    %c7_126 = arith.constant 7 : index
    %c0_127 = arith.constant 0 : index
    %c0_128 = arith.constant 0 : index
    %137 = vector.load %arg6[%c7_126, %c0_127, %c0_128] : memref<9x16x64xbf16, #tpu.memory_space<vmem>>, vector<1x16x64xbf16>
    %138 = vector.shape_cast %137 : vector<1x16x64xbf16> to vector<16x64xbf16>
    %cst_129 = arith.constant dense<0.000000e+00> : vector<16x8xf32>
    %139 = tpu.matmul %138, %81, %cst_129 {dimension_numbers = #tpu.dot_dimension_numbers<[1], [0], [0], [1], [0, 0, 1, 1], [], []>} : vector<16x64xbf16>, vector<64x8xbf16>, vector<16x8xf32> -> vector<16x8xf32>
    %140 = arith.truncf %139 : vector<16x8xf32> to vector<16x8xbf16>
    %c7_130 = arith.constant 7 : index
    %c0_131 = arith.constant 0 : index
    %c0_132 = arith.constant 0 : index
    %141 = vector.load %arg7[%c7_130, %c0_131, %c0_132] : memref<9x8x16xbf16, #tpu.memory_space<vmem>>, vector<1x8x16xbf16>
    %142 = vector.shape_cast %141 : vector<1x8x16xbf16> to vector<8x16xbf16>
    %cst_133 = arith.constant dense<0.000000e+00> : vector<16x16xf32>
    %143 = tpu.matmul %140, %142, %cst_133 {dimension_numbers = #tpu.dot_dimension_numbers<[1], [0], [0], [1], [0, 0, 1, 1], [], []>} : vector<16x8xbf16>, vector<8x16xbf16>, vector<16x16xf32> -> vector<16x16xf32>
    %144 = arith.addf %136, %143 : vector<16x16xf32>
    %c8_134 = arith.constant 8 : index
    %c0_135 = arith.constant 0 : index
    %c0_136 = arith.constant 0 : index
    %145 = vector.load %arg6[%c8_134, %c0_135, %c0_136] : memref<9x16x64xbf16, #tpu.memory_space<vmem>>, vector<1x16x64xbf16>
    %146 = vector.shape_cast %145 : vector<1x16x64xbf16> to vector<16x64xbf16>
    %cst_137 = arith.constant dense<0.000000e+00> : vector<16x8xf32>
    %147 = tpu.matmul %146, %81, %cst_137 {dimension_numbers = #tpu.dot_dimension_numbers<[1], [0], [0], [1], [0, 0, 1, 1], [], []>} : vector<16x64xbf16>, vector<64x8xbf16>, vector<16x8xf32> -> vector<16x8xf32>
    %148 = arith.truncf %147 : vector<16x8xf32> to vector<16x8xbf16>
    %c8_138 = arith.constant 8 : index
    %c0_139 = arith.constant 0 : index
    %c0_140 = arith.constant 0 : index
    %149 = vector.load %arg7[%c8_138, %c0_139, %c0_140] : memref<9x8x16xbf16, #tpu.memory_space<vmem>>, vector<1x8x16xbf16>
    %150 = vector.shape_cast %149 : vector<1x8x16xbf16> to vector<8x16xbf16>
    %cst_141 = arith.constant dense<0.000000e+00> : vector<16x16xf32>
    %151 = tpu.matmul %148, %150, %cst_141 {dimension_numbers = #tpu.dot_dimension_numbers<[1], [0], [0], [1], [0, 0, 1, 1], [], []>} : vector<16x8xbf16>, vector<8x16xbf16>, vector<16x16xf32> -> vector<16x16xf32>
    %152 = arith.addf %144, %151 : vector<16x16xf32>
    %c0_142 = arith.constant 0 : index
    %c0_143 = arith.constant 0 : index
    %153 = vector.load %arg8[%c0_142, %c0_143] : memref<1x16xf32, #tpu.memory_space<vmem>>, vector<1x16xf32>
    %154 = vector.broadcast %153 : vector<1x16xf32> to vector<16x16xf32>
    %155 = arith.mulf %152, %154 : vector<16x16xf32>
    %c0_144 = arith.constant 0 : index
    %c0_145 = arith.constant 0 : index
    %156 = vector.load %arg9[%c0_144, %c0_145] : memref<1x16xf32, #tpu.memory_space<vmem>>, vector<1x16xf32>
    %157 = vector.broadcast %156 : vector<1x16xf32> to vector<16x16xf32>
    %158 = arith.addf %155, %157 : vector<16x16xf32>
    %cst_146 = arith.constant 0.000000e+00 : f32
    %159 = vector.broadcast %cst_146 : f32 to vector<16x16xf32>
    %160 = arith.maximumf %158, %159 : vector<16x16xf32>
    %161 = arith.truncf %160 : vector<16x16xf32> to vector<16x16xbf16>
    %c0_147 = arith.constant 0 : index
    %c0_148 = arith.constant 0 : index
    %162 = vector.load %arg10[%c0_147, %c0_148] : memref<16x32xbf16, #tpu.memory_space<vmem>>, vector<16x32xbf16>
    %cst_149 = arith.constant dense<0.000000e+00> : vector<16x32xf32>
    %163 = tpu.matmul %161, %162, %cst_149 {dimension_numbers = #tpu.dot_dimension_numbers<[1], [0], [0], [1], [0, 0, 1, 1], [], []>} : vector<16x16xbf16>, vector<16x32xbf16>, vector<16x32xf32> -> vector<16x32xf32>
    %c0_150 = arith.constant 0 : index
    %c0_151 = arith.constant 0 : index
    %164 = vector.load %arg11[%c0_150, %c0_151] : memref<1x32xf32, #tpu.memory_space<vmem>>, vector<1x32xf32>
    %165 = vector.broadcast %164 : vector<1x32xf32> to vector<16x32xf32>
    %166 = arith.addf %163, %165 : vector<16x32xf32>
    %c0_152 = arith.constant 0 : index
    %c0_153 = arith.constant 0 : index
    %c0_154 = arith.constant 0 : index
    %167 = vector.load %arg12[%c0_152, %c0_153, %c0_154] : memref<1x16x32xf32, #tpu.memory_space<vmem>>, vector<1x16x32xf32>
    %168 = vector.shape_cast %167 : vector<1x16x32xf32> to vector<16x32xf32>
    %169 = vector.shape_cast %166 : vector<16x32xf32> to vector<1x16x32xf32>
    tpu.vector_store %arg12[%c0_152, %c0_153, %c0_154], %169 {strides = array<i32>} : memref<1x16x32xf32, #tpu.memory_space<vmem>>, vector<1x16x32xf32>,
    return
  }
  func.func @transform_0(%arg0: i32) -> (i32, i32, i32) {
    %c0_i32 = arith.constant 0 : i32
    %c0_i32_0 = arith.constant 0 : i32
    %c0_i32_1 = arith.constant 0 : i32
    return %arg0, %c0_i32, %c0_i32_0 : i32, i32, i32
  }
  func.func @transform_1(%arg0: i32) -> (i32, i32, i32) {
    %c0_i32 = arith.constant 0 : i32
    %c0_i32_0 = arith.constant 0 : i32
    %c0_i32_1 = arith.constant 0 : i32
    %c0_i32_2 = arith.constant 0 : i32
    return %c0_i32, %c0_i32_0, %c0_i32_1 : i32, i32, i32
  }
  func.func @transform_2(%arg0: i32) -> (i32, i32, i32) {
    %c0_i32 = arith.constant 0 : i32
    %c0_i32_0 = arith.constant 0 : i32
    %c0_i32_1 = arith.constant 0 : i32
    %c0_i32_2 = arith.constant 0 : i32
    return %c0_i32, %c0_i32_0, %c0_i32_1 : i32, i32, i32
  }
  func.func @transform_3(%arg0: i32) -> (i32, i32) {
    %c0_i32 = arith.constant 0 : i32
    %c0_i32_0 = arith.constant 0 : i32
    %c0_i32_1 = arith.constant 0 : i32
    return %c0_i32, %c0_i32_0 : i32, i32
  }
  func.func @transform_4(%arg0: i32) -> (i32, i32) {
    %c0_i32 = arith.constant 0 : i32
    %c0_i32_0 = arith.constant 0 : i32
    %c0_i32_1 = arith.constant 0 : i32
    return %c0_i32, %c0_i32_0 : i32, i32
  }
  func.func @transform_5(%arg0: i32) -> (i32, i32, i32) {
    %c0_i32 = arith.constant 0 : i32
    %c0_i32_0 = arith.constant 0 : i32
    %c0_i32_1 = arith.constant 0 : i32
    %c0_i32_2 = arith.constant 0 : i32
    return %c0_i32, %c0_i32_0, %c0_i32_1 : i32, i32, i32
  }
  func.func @transform_6(%arg0: i32) -> (i32, i32, i32) {
    %c0_i32 = arith.constant 0 : i32
    %c0_i32_0 = arith.constant 0 : i32
    %c0_i32_1 = arith.constant 0 : i32
    %c0_i32_2 = arith.constant 0 : i32
    return %c0_i32, %c0_i32_0, %c0_i32_1 : i32, i32, i32
  }
  func.func @transform_7(%arg0: i32) -> (i32, i32) {
    %c0_i32 = arith.constant 0 : i32
    %c0_i32_0 = arith.constant 0 : i32
    %c0_i32_1 = arith.constant 0 : i32
    return %c0_i32, %c0_i32_0 : i32, i32
  }
  func.func @transform_8(%arg0: i32) -> (i32, i32) {
    %c0_i32 = arith.constant 0 : i32
    %c0_i32_0 = arith.constant 0 : i32
    %c0_i32_1 = arith.constant 0 : i32
    return %c0_i32, %c0_i32_0 : i32, i32
  }
  func.func @transform_9(%arg0: i32) -> (i32, i32) {
    %c0_i32 = arith.constant 0 : i32
    %c0_i32_0 = arith.constant 0 : i32
    %c0_i32_1 = arith.constant 0 : i32
    return %c0_i32, %c0_i32_0 : i32, i32
  }
  func.func @transform_10(%arg0: i32) -> (i32, i32) {
    %c0_i32 = arith.constant 0 : i32
    %c0_i32_0 = arith.constant 0 : i32
    %c0_i32_1 = arith.constant 0 : i32
    return %c0_i32, %c0_i32_0 : i32, i32
  }
  func.func @transform_11(%arg0: i32) -> (i32, i32, i32) {
    %c0_i32 = arith.constant 0 : i32
    %c0_i32_0 = arith.constant 0 : i32
    %c0_i32_1 = arith.constant 0 : i32
    return %arg0, %c0_i32, %c0_i32_0 : i32, i32, i32
  }
}

</mosaic_0001>

<bundles_post_ra>
// kernel: tpu_custom_call.1
= control target key start
LH: loop header
LB: loop body
LE: loop exit
PB: predicated region body
PF: predicated region fallthrough
CT: control target
= control target key end

     0   :  { %16 = vsyncpa [#allocation3], 0  ;;  %s5697_s0 = inlined_call_operand.vmem [shape: bf16[2,256,4], index: 0, kind: input, shape index: {}]   ;;  %s5698_s1 = inlined_call_operand.hbm [shape: bf16[9,64,256], index: 1, kind: input, shape index: {}]   ;;  %s5699_s2 = inlined_call_operand.vmem [shape: bf16[9,4,8], index: 2, kind: input, shape index: {}]   ;;  %s5700_s3 = inlined_call_operand.vmem [shape: f32[1,8], index: 3, kind: input, shape index: {}]   ;;  %s5701_s4 = inlined_call_operand.vmem [shape: f32[1,8], index: 4, kind: input, shape index: {}]   ;;  %s5702_s5 = inlined_call_operand.vmem [shape: bf16[9,16,64], index: 5, kind: input, shape index: {}]   ;;  %s5703_s6 = inlined_call_operand.vmem [shape: bf16[9,8,16], index: 6, kind: input, shape index: {}]   ;;  %s5704_s7 = inlined_call_operand.vmem [shape: f32[1,16], index: 7, kind: input, shape index: {}]   ;;  %s5705_s8 = inlined_call_operand.vmem [shape: f32[1,16], index: 8, kind: input, shape index: {}]   ;;  %s5706_s9 = inlined_call_operand.vmem [shape: bf16[16,32], index: 9, kind: input, shape index: {}]   ;;  %s5707_s10 = inlined_call_operand.vmem [shape: f32[1,32], index: 10, kind: input, shape index: {}]   ;;  %s5708_s11 = inlined_call_operand.hbm [shape: f32[2,16,32], index: 11, kind: output, shape index: {}]  }
   0x1   :  { %17 = vsyncpa [#allocation4], 0 }
   0x2   :  { %19 = vsyncpa [#allocation4 + $0x1], 0  ;;  %s4936_s17 = smov 0   ;;  %s4938_s18 = smov 0  }
   0x3   :  { %s4940_s19 = smov 0   ;;  %s4942_s20 = smov 0  }
   0x4 LB: > { %s4957_s21 = sadd.s32 4294967295, %s4866_s20   ;;  %s3532_s22 = sadd.s32 4294967294, %s4866_s20   ;;  %s4866_s20 = sphi %s4942_s20, %s5726_s20   ;;  %s4862_s19 = sphi %s4940_s19, %s5725_s19   ;;  %s4858_s18 = sphi %s4938_s18, %s5724_s18   ;;  %s4854_s17 = sphi %s4936_s17, %s5723_s17  }
   0x5   : > { %s4961_s23 = sadd.s32 1, %s4866_s20   ;;  %s268_s24 = sadd.s32 1, %s4862_s19 }
   0x6   : > { %s265_s25 = ssub.s32 %s4866_s20, %s4961_s23  ;;  %p278_p0 = scmp.ne.s32.totalorder %s4862_s19, %s4858_s18 }
   0x7   : > { %p266_p1 = scmp.eq.s32.totalorder %s265_s25, 0  ;;  %p279_p2 = scmp.eq.s32.totalorder %s4957_s21, 1 }
   0x8   : > { %p284_p3 = scmp.ne.s32.totalorder %s4858_s18, %s4854_s17  ;;  %p285_p4 = scmp.eq.s32.totalorder %s3532_s22, 1 }
   0x9   : > { %s4972_s26 = scalar_select %p266_p1, %s4862_s19, %s268_s24  }
   0xa   : > { %p4974_p5 = por %p279_p2, %p278_p0  ;;  %p4978_p6 = por %p285_p4, %p284_p3 }
   0xb   : > { %5712 = sst [smem:[#allocation8_spill]] %s4972_s26  ;;  %p3533_p7 = scmp.ge.s32.totalorder %s4866_s20, 1 }
   0xc   : > { %s5713_s27 = scalar_select %p4974_p5, 1, 0 }
   0xd   : > { %s5714_s28 = scalar_select %p4978_p6, 1, 0 }
   0xe   : > { %p292_p8 = scmp.lt.s32.totalorder %s4866_s20, 3  ;;  %p5709_p9 = scmp.eq.s32.totalorder %s4957_s21, 0 }
   0xf   : > { %s4868_s30 = smov [#allocation2]   ;;  %s4772_s16 = scalar_lea.hbm %s5698_s1, 9216 }
  0x10   : > { %p4985_p10 = pnand %p3533_p7, %p292_p8  ;;  %s304_s12 = sshll.u32 %s4868_s30, 4  ;;  %s305_s12 = int_to_ptr.vmem [resolvable:$true] %s304_s12 }
  0x11   : > { %p4773_p13 = scmp.ne.s32.totalorder %s5698_s1, %s4772_s16  ;;  %p4779_p3 = scmp.lt.u32.totalorder %s4772_s16, %s5698_s1 }
  0x12   : > { %s5715_s29 = scalar_select %p4985_p10, 1, 0 }
  0x13   : > { %p4575_p11 = pneg %p4985_p10 }
  0x15   : > { %p4993_p12 = pnand %p5709_p9, %p4575_p11 }
  0x17   : > { %p4774_p0 = pneg %p4993_p12 }
  0x19   : > { %p4775_p1 = pnand %p4774_p0, %p4773_p13 }
  0x1b   : > { %p4776_p2 = pneg %p4775_p1 }
  0x1d   : > { %p4781_p4 = pnand %p4779_p3, %p4776_p2 }
  0x1f   : > { %4784 = shalt.err (!%p4781_p4)
}
  0x20   : > { %s4785_s26 = scalar_lea.vmem %s305_s12, 9216  ;;  %p4793_p9 = scmp.lt.s32.totalorder %s305_s12, %s305_s12 }
  0x21   : > { %p4786_p7 = scmp.ne.s32.totalorder %s305_s12, %s4785_s26  ;;  %p4794_p6 = scmp.lt.s32.totalorder %s4785_s26, %s4785_s26 }
  0x23   : > { %p4788_p8 = pnand %p4786_p7, %p4774_p0  ;;  %p4795_p5 = por %p4794_p6, %p4793_p9 }
  0x25   : > { %p4789_p11 = pneg %p4788_p8 }
  0x27   : > { %p4796_p10 = pnand %p4795_p5, %p4789_p11 }
  0x29   : > { %4799 = shalt.err (!%p4796_p10)
}
  0x2a   : > { %s4869_s14 = smov 128   ;;  %s4870_s15 = smov 8  }
  0x2b   : > { %4578 = dma.hbm_to_vmem [thread:$0]  (!%p4993_p12), %s5698_s1, 9216, %s305_s12, [#allocation3], %s4869_s14, %s4869_s14, %s4870_s15  }
  0x2c   : > { %p5717_p13 = scmp.ne.s32.totalorder %s5715_s29, 0 }
  0x2d   : > { %p5718_p1 = scmp.eq.s32.totalorder (!%p5717_p13), %s4957_s21, 0 }
  0x2e   : > { %355 = sbr.rel (%p5717_p13) target bundleno = 2388 (0x954), region = 64 }
  0x35   : > { %4845 = dma.done.wait (%p5718_p1), [#allocation3], 9216   ;;  %p5719_p0 = pmov %p5718_p1 }
  0x36   : > { %p395_p5 = scmp.lt.s32.totalorder %s4957_s21, 1  ;;  %v4643_v11 = vld [vmem:[#allocation2 + $0x44] ss:$8 sps:$4 sm:$0xff]   ;;  %v4641_v18 = vld [vmem:[#allocation2 + $0x40] ss:$8 sps:$4 sm:$0xff]   ;;  %vm780_vm0 = vcmask 1041408  }
  0x37   : > { %4847 = vsyncadd (%p5719_p0), [#allocation3], 4294958080  ;;  %728 = vmatprep.mubr.bf16.mxu1 %v4643_v11  ;;  %v4649_v13 = vld [vmem:[#allocation2 + $0x4] ss:$8 sps:$4 sm:$0xff]   ;;  %v4644_v19 = vld [vmem:[#allocation2 + $0x54] ss:$8 sps:$4 sm:$0xff]  }
  0x38   : > { %s396_s26 = scalar_select %p395_p5, %s4957_s21, 1  ;;  %609 = vmatprep.mubr.bf16.mxu0 %v4649_v13  ;;  %v4647_v20 = vld [vmem:[#allocation2] ss:$8 sps:$4 sm:$0xff]   ;;  %v4653_v21 = vld [vmem:[#allocation2 + $0x14] ss:$8 sps:$4 sm:$0xff]   ;;  %vm767_vm1 = vcmask 31744  }
  0x39   : > { %v4646_v22 = vld [vmem:[#allocation2 + $0x50] ss:$8 sps:$4 sm:$0xff]   ;;  %v4650_v23 = vld [vmem:[#allocation2 + $0x64] ss:$8 sps:$4 sm:$0xff]   ;;  %v4652_v26 = vld [vmem:[#allocation2 + $0x60] ss:$8 sps:$4 sm:$0xff]  }
  0x3a   : > { %s3736_s16 = sshll.u32 %s396_s26, 7  ;;  %v4657_v24 = vld [vmem:[#allocation2 + $0x10] ss:$8 sps:$4 sm:$0xff]   ;;  %v4659_v25 = vld [vmem:[#allocation2 + $0x24] ss:$8 sps:$4 sm:$0xff]   ;;  %vm4872_vm2 = vmmov 0  }
  0x3b   : > { %s5024_s30 = scalar_lea.vmem %s5697_s0, %s3736_s16  ;;  %v4655_v27 = vld [vmem:[#allocation2 + $0x74] ss:$8 sps:$4 sm:$0xff]   ;;  %v4664_v28 = vld [vmem:[#allocation2 + $0x20] ss:$8 sps:$4 sm:$0xff]   ;;  %v4658_v30 = vld [vmem:[#allocation2 + $0x70] ss:$8 sps:$4 sm:$0xff]  }
  0x3c   : > { %v5027_v0 = vld [vmem:[%s5024_s30 + $0x40] sm:$0xff]   ;;  %v5034_v2 = vld [vmem:[%s5024_s30 + $0x48] sm:$0xff]   ;;  %v5044_v4 = vld [vmem:[%s5024_s30 + $0x50] sm:$0xff]   ;;  %vm2434_vm3 = vcmask 523264   ;;  %vm2540_vm4 = vcmask 1043456   ;;  %vm2536_vm5 = vcmask 64512  }
  0x3d   : > { %v5030_v1 = vld [vmem:[%s5024_s30] sm:$0xff]   ;;  %3778 = vmatprep.subr.bf16.mxu1 %v5027_v0  ;;  %3738 = vmatprep.subr.bf16.mxu0 %v5027_v0  ;;  %v5039_v3 = vld [vmem:[%s5024_s30 + $0x8] sm:$0xff]   ;;  %v5049_v5 = vld [vmem:[%s5024_s30 + $0x10] sm:$0xff]   ;;  %vm3396_vm6 = vcmask 130048   ;;  %s392_s13 = sand.u32 1, %s4858_s18   ;;  %s3737_s22 = sshll.u32 %s4957_s21, 8 }
  0x3e   : > { %3779 = vmatpush3.bf16.msra.mxu1 %v5030_v1  ;;  %3739 = vmatpush3.bf16.msra.mxu0 %v5030_v1  ;;  %v5054_v6 = vld [vmem:[%s5024_s30 + $0x58] sm:$0xff]   ;;  %v5064_v8 = vld [vmem:[%s5024_s30 + $0x60] sm:$0xff]   ;;  %v5074_v10 = vld [vmem:[%s5024_s30 + $0x68] sm:$0xff]   ;;  %vm3441_vm7 = vcmask 261120   ;;  %s5654_s16 = scalar_lea.hbm %s5708_s11, %s3737_s22  ;;  %s5656_s21 = scalar_lea.sflag [#allocation4], %s392_s13 }
  0x3f   : > { %3780 = vmatprep.subr.bf16.mxu1 %v5034_v2  ;;  %3740 = vmatprep.subr.bf16.mxu0 %v5034_v2  ;;  %v5059_v7 = vld [vmem:[%s5024_s30 + $0x18] sm:$0xff]   ;;  %v5069_v9 = vld [vmem:[%s5024_s30 + $0x20] sm:$0xff]   ;;  %v5079_v12 = vld [vmem:[%s5024_s30 + $0x28] sm:$0xff]   ;;  %p5720_p9 = scmp.ne.s32.totalorder %s5713_s27, 0 }
  0x40   : > { %v5083_v14 = vld [vmem:[%s5024_s30 + $0x70] sm:$0xff]   ;;  %v5093_v16 = vld [vmem:[%s5024_s30 + $0x78] sm:$0xff]   ;;  %v4663_v31 = vld [vmem:[#allocation2 + $0x84] ss:$8 sps:$4 sm:$0xff]  }
  0x41   : > { %v5089_v15 = vld [vmem:[%s5024_s30 + $0x30] sm:$0xff]   ;;  %v5099_v17 = vld [vmem:[%s5024_s30 + $0x38] sm:$0xff]   ;;  %v4661_v33 = vld [vmem:[#allocation2 + $0x80] ss:$8 sps:$4 sm:$0xff]  }
  0x42   : > { %3781 = vmatpush3.bf16.msra.mxu1 %v5039_v3  ;;  %3741 = vmatpush3.bf16.msra.mxu0 %v5039_v3  ;;  %v4665_v29 = vld [vmem:[#allocation2 + $0x34] ss:$8 sps:$4 sm:$0xff]   ;;  %v4669_v32 = vld [vmem:[#allocation2 + $0x30] ss:$8 sps:$4 sm:$0xff]   ;;  %v4671_v36 = vld [vmem:[#allocation2 + $0xa4] ss:$8 sps:$4 sm:$0xff]  }
  0x43   : > { %3782 = vmatprep.subr.bf16.mxu1 %v5044_v4  ;;  %3742 = vmatprep.subr.bf16.mxu0 %v5044_v4  ;;  %v4667_v34 = vld [vmem:[#allocation2 + $0x94] ss:$8 sps:$4 sm:$0xff]   ;;  %v4670_v35 = vld [vmem:[#allocation2 + $0x90] ss:$8 sps:$4 sm:$0xff]   ;;  %v4673_v37 = vld [vmem:[#allocation2 + $0xa0] ss:$8 sps:$4 sm:$0xff]  }
  0x44   : > { %v4674_v38 = vld [vmem:[#allocation2 + $0xb4] ss:$8 sps:$4 sm:$0xff]   ;;  %v4676_v39 = vld [vmem:[#allocation2 + $0xb0] ss:$8 sps:$4 sm:$0xff]   ;;  %v4679_v40 = vld [vmem:[#allocation2 + $0xc4] ss:$8 sps:$4 sm:$0xff]  }
  0x45   : > { %v4677_v41 = vld [vmem:[#allocation2 + $0xc0] ss:$8 sps:$4 sm:$0xff]   ;;  %v4680_v42 = vld [vmem:[#allocation2 + $0xd4] ss:$8 sps:$4 sm:$0xff]   ;;  %v4682_v43 = vld [vmem:[#allocation2 + $0xd0] ss:$8 sps:$4 sm:$0xff]  }
  0x46   : > { %3783 = vmatpush3.bf16.msra.mxu1 %v5049_v5  ;;  %3743 = vmatpush3.bf16.msra.mxu0 %v5049_v5  ;;  %v4683_v44 = vld [vmem:[#allocation2 + $0xe4] ss:$8 sps:$4 sm:$0xff]   ;;  %v4685_v45 = vld [vmem:[#allocation2 + $0xe0] ss:$8 sps:$4 sm:$0xff]   ;;  %v4686_v46 = vld [vmem:[#allocation2 + $0xf4] ss:$8 sps:$4 sm:$0xff]  }
  0x47   : > { %3784 = vmatprep.subr.bf16.mxu1 %v5054_v6  ;;  %3744 = vmatprep.subr.bf16.mxu0 %v5054_v6  ;;  %v4688_v47 = vld [vmem:[#allocation2 + $0xf0] ss:$8 sps:$4 sm:$0xff]   ;;  %v4691_v48 = vld [vmem:[#allocation2 + $0x104] ss:$8 sps:$4 sm:$0xff]   ;;  %v4689_v49 = vld [vmem:[#allocation2 + $0x100] ss:$8 sps:$4 sm:$0xff]  }
  0x48   : > { %v4692_v50 = vld [vmem:[#allocation2 + $0x114] ss:$8 sps:$4 sm:$0xff]   ;;  %v3573_v51 = vld [vmem:[%s5699_s2 + $0x2] sm:$0x3]  ;;  %v4694_v53 = vld [vmem:[#allocation2 + $0x110] ss:$8 sps:$4 sm:$0xff]  }
  0x49   : > { %v782_v52 = vsel %vm780_vm0, %v3573_v51, 0  ;;  %v4695_v54 = vld [vmem:[#allocation2 + $0x124] ss:$8 sps:$4 sm:$0xff]   ;;  %v4697_v55 = vld [vmem:[#allocation2 + $0x120] ss:$8 sps:$4 sm:$0xff]  }
  0x4a   : > { %3785 = vmatpush3.bf16.msra.mxu1 %v5059_v7  ;;  %3745 = vmatpush3.bf16.msra.mxu0 %v5059_v7  ;;  %v4698_v56 = vld [vmem:[#allocation2 + $0x134] ss:$8 sps:$4 sm:$0xff]   ;;  %v4700_v57 = vld [vmem:[#allocation2 + $0x130] ss:$8 sps:$4 sm:$0xff]   ;;  %v646_v58 = vld [vmem:[%s5699_s2] sm:$0x3] }
  0x4b   : > { %3786 = vmatprep.subr.bf16.mxu1 %v5064_v8  ;;  %3746 = vmatprep.subr.bf16.mxu0 %v5064_v8  ;;  %v4703_v59 = vld [vmem:[#allocation2 + $0x184] ss:$8 sps:$4 sm:$0xff]   ;;  %v4701_v60 = vld [vmem:[#allocation2 + $0x180] ss:$8 sps:$4 sm:$0xff]  }
  0x4e   : > { %3787 = vmatpush3.bf16.msra.mxu1 %v5069_v9  ;;  %3747 = vmatpush3.bf16.msra.mxu0 %v5069_v9 }
  0x4f   : > { %3788 = vmatprep.subr.bf16.mxu1 %v5074_v10  ;;  %3748 = vmatprep.subr.bf16.mxu0 %v5074_v10 }
  0x52   : > { %3789 = vmatpush3.bf16.msra.mxu1 %v5079_v12  ;;  %3749 = vmatpush3.bf16.msra.mxu0 %v5079_v12 }
  0x53   : > { %3790 = vmatprep.subr.bf16.mxu1 %v5083_v14  ;;  %3750 = vmatprep.subr.bf16.mxu0 %v5083_v14 }
  0x56   : > { %3791 = vmatpush3.bf16.msra.mxu1 %v5089_v15  ;;  %3751 = vmatpush3.bf16.msra.mxu0 %v5089_v15 }
  0x57   : > { %3792 = vmatprep.subr.bf16.mxu1 %v5093_v16  ;;  %3752 = vmatprep.subr.bf16.mxu0 %v5093_v16 }
  0x5a   : > { %3793 = vmatpush3.bf16.msra.mxu1 %v5099_v17  ;;  %3753 = vmatpush3.bf16.msra.mxu0 %v5099_v17 }
  0x5b   : > { %3828 = vmatprep.subr.bf16.mxu1 %v5027_v0  ;;  %4560 = vmatprep.subr.msk.bf16.mxu0 %vm780_vm0, %v3573_v51 }
  0x5d   : > { %729 = vmatmul.mubr.bf16.vlgmr.msra.gmra.mrb[0].mxu1 %v4641_v18  ;;  %610 = vmatmul.mubr.bf16.vlgmr.msra.gmra.mrb[0].mxu0 %v4647_v20  ;;  %v4704_v18 = vld [vmem:[#allocation2 + $0x194] ss:$8 sps:$4 sm:$0xff]  }
  0x5e   : > { %3829 = vmatpush3.bf16.msra.mxu1 %v5030_v1  ;;  %736 = vmatprep.mubr.bf16.mxu1 %v4644_v19 }
  0x5f   : > { %3830 = vmatprep.subr.bf16.mxu1 %v5034_v2  ;;  %617 = vmatprep.mubr.bf16.mxu0 %v4653_v21  ;;  %v4706_v21 = vld [vmem:[#allocation2 + $0x190] ss:$8 sps:$4 sm:$0xff]  }
  0x60   : > { %4209 = vmatpush3.bf16.msra.mxu0 %v782_v52 }
  0x61   : > { %4561 = vmatprep.subr.msk.bf16.mxu0 %vm780_vm0, %v646_v58 }
  0x62   : > { %3831 = vmatpush3.bf16.msra.mxu1 %v5039_v3 }
  0x63   : > { %3832 = vmatprep.subr.bf16.mxu1 %v5044_v4 }
  0x65   : > { %737 = vmatmul.mubr.bf16.gmra.mrb[4].mxu1 %v4646_v22  ;;  %618 = vmatmul.mubr.bf16.gmra.mrb[4].mxu0 %v4657_v24 }
  0x66   : > { %3833 = vmatpush3.bf16.msra.mxu1 %v5049_v5  ;;  %744 = vmatprep.mubr.bf16.mxu1 %v4650_v23 }
  0x67   : > { %3834 = vmatprep.subr.bf16.mxu1 %v5054_v6  ;;  %625 = vmatprep.mubr.bf16.mxu0 %v4659_v25 }
  0x6a   : > { %3835 = vmatpush3.bf16.msra.mxu1 %v5059_v7 }
  0x6b   : > { %3836 = vmatprep.subr.bf16.mxu1 %v5064_v8 }
  0x6d   : > { %745 = vmatmul.mubr.bf16.gmra.mrb[8].mxu1 %v4652_v26  ;;  %626 = vmatmul.mubr.bf16.gmra.mrb[8].mxu0 %v4664_v28 }
  0x6e   : > { %3837 = vmatpush3.bf16.msra.mxu1 %v5069_v9  ;;  %752 = vmatprep.mubr.bf16.mxu1 %v4655_v27 }
  0x6f   : > { %3838 = vmatprep.subr.bf16.mxu1 %v5074_v10  ;;  %633 = vmatprep.mubr.bf16.mxu0 %v4665_v29 }
  0x72   : > { %3839 = vmatpush3.bf16.msra.mxu1 %v5079_v12 }
  0x73   : > { %3840 = vmatprep.subr.bf16.mxu1 %v5083_v14 }
  0x75   : > { %753 = vmatmul.mubr.bf16.gmra.mrb[12].mxu1 %v4658_v30  ;;  %634 = vmatmul.mubr.bf16.gmra.mrb[12].mxu0 %v4669_v32 }
  0x76   : > { %3841 = vmatpush3.bf16.msra.mxu1 %v5089_v15  ;;  %1010 = vmatprep.mubr.bf16.mxu1 %v4663_v31 }
  0x77   : > { %3842 = vmatprep.subr.bf16.mxu1 %v5093_v16 }
  0x7a   : > { %3843 = vmatpush3.bf16.msra.mxu1 %v5099_v17 }
  0x7b   : > { %3873 = vmatprep.subr.bf16.mxu1 %v5027_v0 }
  0x7d   : > { %1011 = vmatmul.mubr.bf16.vlgmr.msra.gmra.mrb[16].mxu1 %v4661_v33 }
  0x7e   : > { %3874 = vmatpush3.bf16.msra.mxu1 %v5030_v1  ;;  %1018 = vmatprep.mubr.bf16.mxu1 %v4667_v34  ;;  %v4710_v34 = vld [vmem:[#allocation2 + $0x1a4] ss:$8 sps:$4 sm:$0xff]  }
  0x7f   : > { %3875 = vmatprep.subr.bf16.mxu1 %v5034_v2 }
  0x82   : > { %3876 = vmatpush3.bf16.msra.mxu1 %v5039_v3 }
  0x83   : > { %3877 = vmatprep.subr.bf16.mxu1 %v5044_v4 }
  0x85   : > { %1019 = vmatmul.mubr.bf16.gmra.mrb[20].mxu1 %v4670_v35 }
  0x86   : > { %3878 = vmatpush3.bf16.msra.mxu1 %v5049_v5  ;;  %1026 = vmatprep.mubr.bf16.mxu1 %v4671_v36 }
  0x87   : > { %3879 = vmatprep.subr.bf16.mxu1 %v5054_v6 }
  0x8a   : > { %3880 = vmatpush3.bf16.msra.mxu1 %v5059_v7 }
  0x8b   : > { %3881 = vmatprep.subr.bf16.mxu1 %v5064_v8 }
  0x8d   : > { %1027 = vmatmul.mubr.bf16.gmra.mrb[24].mxu1 %v4673_v37  ;;  %v4712_v37 = vld [vmem:[#allocation2 + $0x1a0] ss:$8 sps:$4 sm:$0xff]  }
  0x8e   : > { %3882 = vmatpush3.bf16.msra.mxu1 %v5069_v9  ;;  %1034 = vmatprep.mubr.bf16.mxu1 %v4674_v38 }
  0x8f   : > { %3883 = vmatprep.subr.bf16.mxu1 %v5074_v10 }
  0x92   : > { %3884 = vmatpush3.bf16.msra.mxu1 %v5079_v12 }
  0x93   : > { %3885 = vmatprep.subr.bf16.mxu1 %v5083_v14 }
  0x95   : > { %1035 = vmatmul.mubr.bf16.gmra.mrb[28].mxu1 %v4676_v39 }
  0x96   : > { %3886 = vmatpush3.bf16.msra.mxu1 %v5089_v15  ;;  %1218 = vmatprep.mubr.bf16.mxu1 %v4679_v40 }
  0x97   : > { %3887 = vmatprep.subr.bf16.mxu1 %v5093_v16 }
  0x9a   : > { %3888 = vmatpush3.bf16.msra.mxu1 %v5099_v17 }
  0x9b   : > { %3918 = vmatprep.subr.bf16.mxu1 %v5027_v0 }
  0x9d   : > { %1219 = vmatmul.mubr.bf16.vlgmr.msra.gmra.mrb[32].mxu1 %v4677_v41 }
  0x9e   : > { %3919 = vmatpush3.bf16.msra.mxu1 %v5030_v1  ;;  %1226 = vmatprep.mubr.bf16.mxu1 %v4680_v42 }
  0x9f   : > { %3920 = vmatprep.subr.bf16.mxu1 %v5034_v2 }
  0xa2   : > { %3921 = vmatpush3.bf16.msra.mxu1 %v5039_v3 }
  0xa3   : > { %3922 = vmatprep.subr.bf16.mxu1 %v5044_v4 }
  0xa5   : > { %1227 = vmatmul.mubr.bf16.gmra.mrb[36].mxu1 %v4682_v43 }
  0xa6   : > { %3923 = vmatpush3.bf16.msra.mxu1 %v5049_v5  ;;  %1234 = vmatprep.mubr.bf16.mxu1 %v4683_v44  ;;  %v862_v44 = vsel %vm780_vm0, %v646_v58, 0 }
  0xa7   : > { %3924 = vmatprep.subr.bf16.mxu1 %v5054_v6 }
  0xaa   : > { %3925 = vmatpush3.bf16.msra.mxu1 %v5059_v7 }
  0xab   : > { %3926 = vmatprep.subr.bf16.mxu1 %v5064_v8 }
  0xad   : > { %1235 = vmatmul.mubr.bf16.gmra.mrb[40].mxu1 %v4685_v45  ;;  %v5204_v45 = vld [vmem:[%s5699_s2 + $0x4] sm:$0x3] }
  0xae   : > { %3927 = vmatpush3.bf16.msra.mxu1 %v5069_v9  ;;  %1242 = vmatprep.mubr.bf16.mxu1 %v4686_v46 }
  0xaf   : > { %3928 = vmatprep.subr.bf16.mxu1 %v5074_v10 }
  0xb2   : > { %3929 = vmatpush3.bf16.msra.mxu1 %v5079_v12 }
  0xb3   : > { %3930 = vmatprep.subr.bf16.mxu1 %v5083_v14 }
  0xb5   : > { %1243 = vmatmul.mubr.bf16.gmra.mrb[44].mxu1 %v4688_v47 }
  0xb6   : > { %3931 = vmatpush3.bf16.msra.mxu1 %v5089_v15  ;;  %1426 = vmatprep.mubr.bf16.mxu1 %v4691_v48 }
  0xb7   : > { %3932 = vmatprep.subr.bf16.mxu1 %v5093_v16 }
  0xba   : > { %3933 = vmatpush3.bf16.msra.mxu1 %v5099_v17 }
  0xbb   : > { %4008 = vmatprep.subr.bf16.mxu1 %v5027_v0 }
  0xbd   : > { %1427 = vmatmul.mubr.bf16.vlgmr.msra.gmra.mrb[48].mxu1 %v4689_v49  ;;  %v4715_v49 = vld [vmem:[#allocation2 + $0x1b4] ss:$8 sps:$4 sm:$0xff]  }
  0xbe   : > { %1434 = vmatprep.mubr.bf16.mxu1 %v4692_v50  ;;  %4009 = vmatpush3.bf16.msra.mxu1 %v5030_v1 }
  0xbf   : > { %4010 = vmatprep.subr.bf16.mxu1 %v5034_v2 }
  0xc2   : > { %4011 = vmatpush3.bf16.msra.mxu1 %v5039_v3 }
  0xc3   : > { %4012 = vmatprep.subr.bf16.mxu1 %v5044_v4 }
  0xc5   : > { %1435 = vmatmul.mubr.bf16.gmra.mrb[52].mxu1 %v4694_v53 }
  0xc6   : > { %1442 = vmatprep.mubr.bf16.mxu1 %v4695_v54  ;;  %4013 = vmatpush3.bf16.msra.mxu1 %v5049_v5 }
  0xc7   : > { %4014 = vmatprep.subr.bf16.mxu1 %v5054_v6 }
  0xca   : > { %4015 = vmatpush3.bf16.msra.mxu1 %v5059_v7 }
  0xcb   : > { %4016 = vmatprep.subr.bf16.mxu1 %v5064_v8 }
  0xcd   : > { %1443 = vmatmul.mubr.bf16.gmra.mrb[56].mxu1 %v4697_v55  ;;  %v4718_v55 = vld [vmem:[#allocation2 + $0x1b0] ss:$8 sps:$4 sm:$0xff]  }
  0xce   : > { %1450 = vmatprep.mubr.bf16.mxu1 %v4698_v56  ;;  %4017 = vmatpush3.bf16.msra.mxu1 %v5069_v9 }
  0xcf   : > { %4018 = vmatprep.subr.bf16.mxu1 %v5074_v10 }
  0xd2   : > { %4019 = vmatpush3.bf16.msra.mxu1 %v5079_v12 }
  0xd3   : > { %4020 = vmatprep.subr.bf16.mxu1 %v5083_v14 }
  0xd5   : > { %1451 = vmatmul.mubr.bf16.gmra.mrb[60].mxu1 %v4700_v57 }
  0xd6   : > { %4021 = vmatpush3.bf16.msra.mxu1 %v5089_v15  ;;  %1842 = vmatprep.mubr.bf16.mxu1 %v4703_v59 }
  0xd7   : > { %4022 = vmatprep.subr.bf16.mxu1 %v5093_v16 }
  0xda   : > { %4023 = vmatpush3.bf16.msra.mxu1 %v5099_v17 }
  0xdb   : > { %4053 = vmatprep.subr.bf16.mxu1 %v5027_v0 }
  0xdd   : > { %1843 = vmatmul.mubr.bf16.vlgmr.msra.gmra.mrb[64].mxu1 %v4701_v60 }
  0xde   : > { %4054 = vmatpush3.bf16.msra.mxu1 %v5030_v1  ;;  %1850 = vmatprep.mubr.bf16.mxu1 %v4704_v18  ;;  %v4723_v18 = vld [vmem:[#allocation2 + $0x1c4] ss:$8 sps:$4 sm:$0xff]  }
  0xdf   : > { %4055 = vmatprep.subr.bf16.mxu1 %v5034_v2 }
  0xe2   : > { %4056 = vmatpush3.bf16.msra.mxu1 %v5039_v3 }
  0xe3   : > { %4057 = vmatprep.subr.bf16.mxu1 %v5044_v4 }
  0xe5   : > { %1851 = vmatmul.mubr.bf16.gmra.mrb[68].mxu1 %v4706_v21 }
  0xe6   : > { %4058 = vmatpush3.bf16.msra.mxu1 %v5049_v5  ;;  %1858 = vmatprep.mubr.bf16.mxu1 %v4710_v34 }
  0xe7   : > { %4059 = vmatprep.subr.bf16.mxu1 %v5054_v6 }
  0xea   : > { %4060 = vmatpush3.bf16.msra.mxu1 %v5059_v7 }
  0xeb   : > { %4061 = vmatprep.subr.bf16.mxu1 %v5064_v8 }
  0xed   : > { %1859 = vmatmul.mubr.bf16.gmra.mrb[72].mxu1 %v4712_v37 }
  0xee   : > { %4062 = vmatpush3.bf16.msra.mxu1 %v5069_v9  ;;  %1866 = vmatprep.mubr.bf16.mxu1 %v4715_v49 }
  0xef   : > { %4063 = vmatprep.subr.bf16.mxu1 %v5074_v10 }
  0xf2   : > { %4064 = vmatpush3.bf16.msra.mxu1 %v5079_v12 }
  0xf3   : > { %4065 = vmatprep.subr.bf16.mxu1 %v5083_v14 }
  0xf5   : > { %1867 = vmatmul.mubr.bf16.gmra.mrb[76].mxu1 %v4718_v55  ;;  %v4740_v55 = vld [vmem:[#allocation2 + $0x214] ss:$8 sps:$4 sm:$0xff]  }
  0xf6   : > { %4066 = vmatpush3.bf16.msra.mxu1 %v5089_v15  ;;  %2050 = vmatprep.mubr.bf16.mxu1 %v4723_v18 }
  0xf7   : > { %4067 = vmatprep.subr.bf16.mxu1 %v5093_v16 }
  0xfa   : > { %4068 = vmatpush3.bf16.msra.mxu1 %v5099_v17 }
  0xfb   : > { %4098 = vmatprep.subr.bf16.mxu1 %v5027_v0  ;;  %v4727_v0 = vld [vmem:[#allocation2 + $0x1d4] ss:$8 sps:$4 sm:$0xff]  }
 0x130   : > { %v3794_v61 = vpop.f32.mrb[0].mxu1  ;;  %v3754_v13 = vpop.f32.mrb[0].mxu0 }
 0x131   : > { %v3795_v62 = vpop.f32.mrb[1].mxu1  ;;  %v3755_v20 = vpop.f32.mrb[1].mxu0 }
 0x132   : > { %v3796_v63 = vadd.f32 %v3795_v62, %v3794_v61  ;;  %v3797_v11 = vpop.f32.mrb[2].mxu1  ;;  %v5184_v23 = vadd.f32 %v3755_v20, %v3754_v13  ;;  %v3757_v24 = vpop.f32.mrb[2].mxu0  ;;  %v4721_v13 = vld [vmem:[#allocation2 + $0x1c0] ss:$8 sps:$4 sm:$0xff]  }
 0x133   : > { %v3798_v19 = vpop.f32.mrb[3].mxu1  ;;  %v3758_v25 = vpop.f32.mrb[3].mxu0  ;;  %2051 = vmatmul.mubr.bf16.vlgmr.msra.gmra.mrb[80].mxu1 %v4721_v13 }
 0x134   : > { %v3799_v22 = vadd.f32 %v3798_v19, %v3797_v11  ;;  %v5186_v27 = vadd.f32 %v3758_v25, %v3757_v24  ;;  %4099 = vmatpush3.bf16.msra.mxu1 %v5030_v1  ;;  %2058 = vmatprep.mubr.bf16.mxu1 %v4727_v0  ;;  %v4730_v1 = vld [vmem:[#allocation2 + $0x1d0] ss:$8 sps:$4 sm:$0xff]  }
 0x135   : > { %4100 = vmatprep.subr.bf16.mxu1 %v5034_v2 }
 0x136   : > { %v761_v26 = vpack.c.bf16 %v3799_v22, %v3796_v63  ;;  %v642_v29 = vpack.c.bf16 %v5186_v27, %v5184_v23  ;;  %v3603_v23 = vld [vmem:[%s5699_s2 + $0x6] sm:$0x3] }
 0x138   : > { %v3800_v28 = vpop.f32.mrb[4].mxu1  ;;  %4210 = vmatprep.mubr.msk.bf16.mxu0 %vm767_vm1, %v761_v26  ;;  %v3760_v33 = vpop.f32.mrb[4].mxu0  ;;  %4101 = vmatpush3.bf16.msra.mxu1 %v5039_v3 }
 0x139   : > { %v3801_v30 = vpop.f32.mrb[5].mxu1  ;;  %v3761_v36 = vpop.f32.mrb[5].mxu0  ;;  %4102 = vmatprep.subr.bf16.mxu1 %v5044_v4  ;;  %v4731_v4 = vld [vmem:[#allocation2 + $0x1e4] ss:$8 sps:$4 sm:$0xff]  }
 0x13a   : > { %v3802_v31 = vadd.f32 %v3801_v30, %v3800_v28  ;;  %v3803_v32 = vpop.f32.mrb[6].mxu1  ;;  %v5195_v39 = vadd.f32 %v3761_v36, %v3760_v33  ;;  %v3763_v40 = vpop.f32.mrb[6].mxu0 }
 0x13b   : > { %v3804_v35 = vpop.f32.mrb[7].mxu1  ;;  %v3764_v41 = vpop.f32.mrb[7].mxu0  ;;  %2059 = vmatmul.mubr.bf16.gmra.mrb[84].mxu1 %v4730_v1 }
 0x13c   : > { %v3805_v38 = vadd.f32 %v3804_v35, %v3803_v32  ;;  %v5197_v43 = vadd.f32 %v3764_v41, %v3763_v40  ;;  %v1062_v41 = vsel %vm780_vm0, %v5204_v45, 0  ;;  %4103 = vmatpush3.bf16.msra.mxu1 %v5049_v5  ;;  %2066 = vmatprep.mubr.bf16.mxu1 %v4731_v4 }
 0x13d   : > { %4104 = vmatprep.subr.bf16.mxu1 %v5054_v6 }
 0x13e   : > { %v762_v42 = vpack.c.bf16 %v3805_v38, %v3802_v31  ;;  %v643_v47 = vpack.c.bf16 %v5197_v43, %v5195_v39 }
 0x140   : > { %v3806_v46 = vpop.f32.mrb[8].mxu1  ;;  %4211 = vmatmul.mubr.msk.bf16.vlgmr.msra.gmra.mrb[16].mxu0 %vm767_vm1, %v762_v42  ;;  %v3766_v52 = vpop.f32.mrb[8].mxu0  ;;  %4105 = vmatpush3.bf16.msra.mxu1 %v5059_v7  ;;  %v4736_v7 = vld [vmem:[#allocation2 + $0x1f0] ss:$8 sps:$4 sm:$0xff]  }
 0x141   : > { %v3807_v48 = vpop.f32.mrb[9].mxu1  ;;  %4219 = vmatpush3.bf16.msra.mxu0 %v862_v44  ;;  %v3767_v54 = vpop.f32.mrb[9].mxu0  ;;  %v4734_v44 = vld [vmem:[#allocation2 + $0x1f4] ss:$8 sps:$4 sm:$0xff]   ;;  %4106 = vmatprep.subr.bf16.mxu1 %v5064_v8  ;;  %v4739_v8 = vld [vmem:[#allocation2 + $0x204] ss:$8 sps:$4 sm:$0xff]  }
 0x142   : > { %v3808_v50 = vadd.f32 %v3807_v48, %v3806_v46  ;;  %v3809_v51 = vpop.f32.mrb[10].mxu1  ;;  %4562 = vmatprep.subr.msk.bf16.mxu0 %vm780_vm0, %v5204_v45  ;;  %v3768_v57 = vadd.f32 %v3767_v54, %v3766_v52  ;;  %v3769_v58 = vpop.f32.mrb[10].mxu0 }
 0x143   : > { %v3810_v53 = vpop.f32.mrb[11].mxu1  ;;  %v3770_v59 = vpop.f32.mrb[11].mxu0 }
 0x144   : > { %v3811_v56 = vadd.f32 %v3810_v53, %v3809_v51  ;;  %v3771_v61 = vadd.f32 %v3770_v59, %v3769_v58  ;;  %4107 = vmatpush3.bf16.msra.mxu1 %v5069_v9  ;;  %v3616_v51 = vld [vmem:[%s5699_s2 + $0x8] sm:$0x3] }
 0x145   : > { %4108 = vmatprep.subr.bf16.mxu1 %v5074_v10  ;;  %v1270_v10 = vsel %vm780_vm0, %v3603_v23, 0 }
 0x146   : > { %v763_v60 = vpack.c.bf16 %v3811_v56, %v3808_v50  ;;  %v644_v63 = vpack.c.bf16 %v3771_v61, %v3768_v57  ;;  %v4742_v61 = vld [vmem:[#allocation2 + $0x210] ss:$8 sps:$4 sm:$0xff]  }
 0x148   : > { %v3812_v62 = vpop.f32.mrb[12].mxu1  ;;  %4214 = vmatprep.mubr.msk.bf16.mxu0 %vm767_vm1, %v763_v60  ;;  %v3772_v21 = vpop.f32.mrb[12].mxu0  ;;  %4109 = vmatpush3.bf16.msra.mxu1 %v5079_v12 }
 0x149   : > { %v3813_v11 = vpop.f32.mrb[13].mxu1  ;;  %v3773_v24 = vpop.f32.mrb[13].mxu0  ;;  %4110 = vmatprep.subr.bf16.mxu1 %v5083_v14  ;;  %v4737_v14 = vld [vmem:[#allocation2 + $0x200] ss:$8 sps:$4 sm:$0xff]  }
 0x14a   : > { %v3814_v19 = vadd.f32 %v3813_v11, %v3812_v62  ;;  %v3815_v20 = vpop.f32.mrb[14].mxu1  ;;  %v3774_v26 = vadd.f32 %v3773_v24, %v3772_v21  ;;  %v3775_v28 = vpop.f32.mrb[14].mxu0  ;;  %v4743_v11 = vld [vmem:[#allocation2 + $0x224] ss:$8 sps:$4 sm:$0xff]  }
 0x14b   : > { %v3816_v22 = vpop.f32.mrb[15].mxu1  ;;  %v3776_v30 = vpop.f32.mrb[15].mxu0 }
 0x14c   : > { %v3817_v25 = vadd.f32 %v3816_v22, %v3815_v20  ;;  %v3777_v32 = vadd.f32 %v3776_v30, %v3775_v28  ;;  %4111 = vmatpush3.bf16.msra.mxu1 %v5089_v15  ;;  %v4745_v22 = vld [vmem:[#allocation2 + $0x220] ss:$8 sps:$4 sm:$0xff]  }
 0x14d   : > { %4112 = vmatprep.subr.bf16.mxu1 %v5093_v16 }
 0x14e   : > { %v764_v31 = vpack.c.bf16 %v3817_v25, %v3814_v19  ;;  %v645_v34 = vpack.c.bf16 %v3777_v32, %v3774_v26  ;;  %v4746_v26 = vld [vmem:[#allocation2 + $0x234] ss:$8 sps:$4 sm:$0xff]   ;;  %v1478_v32 = vsel %vm780_vm0, %v3616_v51, 0 }
 0x150   : > { %4215 = vmatmul.mubr.msk.bf16.gmra.mrb[20].mxu0 %vm767_vm1, %v764_v31  ;;  %v3844_v33 = vpop.f32.mrb[16].mxu1  ;;  %4113 = vmatpush3.bf16.msra.mxu1 %v5099_v17 }
 0x151   : > { %v3845_v35 = vpop.f32.mrb[17].mxu1  ;;  %4220 = vmatprep.mubr.msk.bf16.mxu0 %vm767_vm1, %v642_v29  ;;  %v4733_v29 = vld [vmem:[#allocation2 + $0x1e0] ss:$8 sps:$4 sm:$0xff]  }
 0x152   : > { %v3846_v36 = vadd.f32 %v3845_v35, %v3844_v33  ;;  %v3847_v37 = vpop.f32.mrb[18].mxu1  ;;  %2067 = vmatmul.mubr.bf16.gmra.mrb[88].mxu1 %v4733_v29  ;;  %v4748_v35 = vld [vmem:[#allocation2 + $0x230] ss:$8 sps:$4 sm:$0xff]  }
 0x153   : > { %v3848_v38 = vpop.f32.mrb[19].mxu1  ;;  %2074 = vmatprep.mubr.bf16.mxu1 %v4734_v44 }
 0x154   : > { %v3849_v2 = vadd.f32 %v3848_v38, %v3847_v37  ;;  %v4759_v37 = vld [vmem:[%s5024_s30 + $0x40] sm:$0xff]  }
 0x156   : > { %v1043_v40 = vpack.c.bf16 %v3849_v2, %v3846_v36 }
 0x158   : > { %4221 = vmatmul.mubr.msk.bf16.vlgmr.msra.gmra.mrb[16].mxu0 %vm767_vm1, %v643_v47  ;;  %v3850_v3 = vpop.f32.mrb[20].mxu1 }
 0x159   : > { %v3851_v27 = vpop.f32.mrb[21].mxu1  ;;  %4224 = vmatprep.mubr.msk.bf16.mxu0 %vm767_vm1, %v644_v63  ;;  %4229 = vmatpush3.bf16.msra.mxu0 %v1062_v41 }
 0x15a   : > { %v3852_v42 = vadd.f32 %v3851_v27, %v3850_v3  ;;  %v3853_v5 = vpop.f32.mrb[22].mxu1  ;;  %4563 = vmatprep.subr.msk.bf16.mxu0 %vm780_vm0, %v3603_v23  ;;  %2075 = vmatmul.mubr.bf16.gmra.mrb[92].mxu1 %v4736_v7 }
 0x15b   : > { %v3854_v6 = vpop.f32.mrb[23].mxu1  ;;  %2258 = vmatprep.mubr.bf16.mxu1 %v4739_v8 }
 0x15c   : > { %v3855_v39 = vadd.f32 %v3854_v6, %v3853_v5 }
 0x15e   : > { %v1044_v43 = vpack.c.bf16 %v3855_v39, %v3852_v42 }
 0x160   : > { %4225 = vmatmul.mubr.msk.bf16.gmra.mrb[20].mxu0 %vm767_vm1, %v645_v34  ;;  %v3856_v45 = vpop.f32.mrb[24].mxu1 }
 0x161   : > { %v3857_v46 = vpop.f32.mrb[25].mxu1  ;;  %4230 = vmatprep.mubr.msk.bf16.mxu0 %vm767_vm1, %v1043_v40 }
 0x162   : > { %v3858_v47 = vadd.f32 %v3857_v46, %v3856_v45  ;;  %v3859_v48 = vpop.f32.mrb[26].mxu1  ;;  %2259 = vmatmul.mubr.bf16.vlgmr.msra.gmra.mrb[96].mxu1 %v4737_v14 }
 0x163   : > { %v3860_v49 = vpop.f32.mrb[27].mxu1  ;;  %2266 = vmatprep.mubr.bf16.mxu1 %v4740_v55  ;;  %v4762_v55 = vld [vmem:[%s5024_s30 + $0x8] sm:$0xff]  }
 0x164   : > { %v3861_v50 = vadd.f32 %v3860_v49, %v3859_v48 }
 0x166   : > { %v1045_v9 = vpack.c.bf16 %v3861_v50, %v3858_v47 }
 0x168   : > { %v3862_v52 = vpop.f32.mrb[28].mxu1  ;;  %4231 = vmatmul.mubr.msk.bf16.vlgmr.msra.gmra.mrb[16].mxu0 %vm767_vm1, %v1044_v43 }
 0x169   : > { %v3863_v12 = vpop.f32.mrb[29].mxu1  ;;  %4234 = vmatprep.mubr.msk.bf16.mxu0 %vm767_vm1, %v1045_v9  ;;  %4239 = vmatpush3.bf16.msra.mxu0 %v1270_v10  ;;  %v4760_v10 = vld [vmem:[%s5024_s30] sm:$0xff]  }
 0x16a   : > { %v3864_v53 = vadd.f32 %v3863_v12, %v3862_v52  ;;  %v3865_v54 = vpop.f32.mrb[30].mxu1  ;;  %4564 = vmatprep.subr.msk.bf16.mxu0 %vm780_vm0, %v3616_v51  ;;  %2267 = vmatmul.mubr.bf16.gmra.mrb[100].mxu1 %v4742_v61  ;;  %v4761_v52 = vld [vmem:[%s5024_s30 + $0x48] sm:$0xff]   ;;  %v4765_v61 = vld [vmem:[%s5024_s30 + $0x58] sm:$0xff]  }
 0x16b   : > { %v3866_v56 = vpop.f32.mrb[31].mxu1  ;;  %2274 = vmatprep.mubr.bf16.mxu1 %v4743_v11 }
 0x16c   : > { %v3867_v57 = vadd.f32 %v3866_v56, %v3865_v54 }
 0x16e   : > { %v1046_v58 = vpack.c.bf16 %v3867_v57, %v3864_v53  ;;  %v4763_v57 = vld [vmem:[%s5024_s30 + $0x50] sm:$0xff]  }
 0x170   : > { %4235 = vmatmul.mubr.msk.bf16.gmra.mrb[20].mxu0 %vm767_vm1, %v1046_v58  ;;  %v3889_v59 = vpop.f32.mrb[32].mxu1 }
 0x171   : > { %v3890_v60 = vpop.f32.mrb[33].mxu1 }
 0x172   : > { %v3891_v62 = vadd.f32 %v3890_v60, %v3889_v59  ;;  %v3892_v63 = vpop.f32.mrb[34].mxu1  ;;  %2275 = vmatmul.mubr.bf16.gmra.mrb[104].mxu1 %v4745_v22  ;;  %v4764_v59 = vld [vmem:[%s5024_s30 + $0x10] sm:$0xff]   ;;  %v4768_v22 = vld [vmem:[%s5024_s30 + $0x20] sm:$0xff]  }
 0x173   : > { %v3893_v13 = vpop.f32.mrb[35].mxu1  ;;  %2282 = vmatprep.mubr.bf16.mxu1 %v4746_v26  ;;  %v4771_v26 = vld [vmem:[%s5024_s30 + $0x70] sm:$0xff]  }
 0x174   : > { %v3894_v18 = vadd.f32 %v3893_v13, %v3892_v63 }
 0x176   : > { %v1251_v19 = vpack.c.bf16 %v3894_v18, %v3891_v62  ;;  %v4766_v18 = vld [vmem:[%s5024_s30 + $0x18] sm:$0xff]  }
 0x178   : > { %v3895_v20 = vpop.f32.mrb[36].mxu1  ;;  %4240 = vmatprep.mubr.msk.bf16.mxu0 %vm767_vm1, %v1251_v19  ;;  %v4709_v19 = vld [vmem:[#allocation2 + $0x144] ss:$8 sps:$4 sm:$0xff]  }
 0x179   : > { %v3896_v21 = vpop.f32.mrb[37].mxu1 }
 0x17a   : > { %v3897_v24 = vadd.f32 %v3896_v21, %v3895_v20  ;;  %v3898_v25 = vpop.f32.mrb[38].mxu1  ;;  %2283 = vmatmul.mubr.bf16.gmra.mrb[108].mxu1 %v4748_v35  ;;  %v4767_v21 = vld [vmem:[%s5024_s30 + $0x60] sm:$0xff]   ;;  %v4729_v35 = vld [vmem:[#allocation2 + $0x170] ss:$8 sps:$4 sm:$0xff]  }
 0x17b   : > { %v3899_v28 = vpop.f32.mrb[39].mxu1 }
 0x17c   : > { %v3900_v30 = vadd.f32 %v3899_v28, %v3898_v25  ;;  %v4770_v25 = vld [vmem:[%s5024_s30 + $0x28] sm:$0xff]  }
 0x17d   : > { %v4707_v28 = vld [vmem:[#allocation2 + $0x140] ss:$8 sps:$4 sm:$0xff]  }
 0x17e   : > { %v1252_v31 = vpack.c.bf16 %v3900_v30, %v3897_v24  ;;  %v4769_v24 = vld [vmem:[%s5024_s30 + $0x68] sm:$0xff]   ;;  %v4713_v30 = vld [vmem:[#allocation2 + $0x154] ss:$8 sps:$4 sm:$0xff]   ;;  %s3538_s30 = sshll.u32 %s392_s13, 4 }
 0x17f   : > { %s394_s14 = scalar_lea.vmem [#allocation5], %s3538_s30  ;;  %s4873_s30 = smov [#allocation5]  }
 0x180   : > { %v3901_v33 = vpop.f32.mrb[40].mxu1  ;;  %4241 = vmatmul.mubr.msk.bf16.vlgmr.msra.gmra.mrb[16].mxu0 %vm767_vm1, %v1252_v31  ;;  %v4717_v31 = vld [vmem:[#allocation2 + $0x150] ss:$8 sps:$4 sm:$0xff]   ;;  %s3458_s15 = sshll.u32 %s394_s14, 4  ;;  %s4804_s29 = sshll.u32 %s4873_s30, 4  ;;  %s5649_s15 = int_to_ptr.vmem [resolvable:$true] %s3458_s15  ;;  %s4805_s29 = int_to_ptr.vmem [resolvable:$false] %s4804_s29 }
 0x181   : > { %v3902_v34 = vpop.f32.mrb[41].mxu1  ;;  %4249 = vmatpush3.bf16.msra.mxu0 %v1478_v32  ;;  %v4719_v32 = vld [vmem:[#allocation2 + $0x164] ss:$8 sps:$4 sm:$0xff]   ;;  %s4800_s25 = scalar_lea.vmem %s5649_s15, 256  ;;  %s4806_s12 = scalar_lea.vmem %s4805_s29, 512 }
 0x182   : > { %v3903_v0 = vadd.f32 %v3902_v34, %v3901_v33  ;;  %v3904_v36 = vpop.f32.mrb[42].mxu1  ;;  %3963 = vmatprep.subr.bf16.mxu0 %v4759_v37  ;;  %v4724_v33 = vld [vmem:[#allocation2 + $0x160] ss:$8 sps:$4 sm:$0xff]   ;;  %v4725_v34 = vld [vmem:[#allocation2 + $0x174] ss:$8 sps:$4 sm:$0xff]   ;;  %p4801_p6 = scmp.ne.s32.totalorder %s5649_s15, %s4800_s25  ;;  %p4807_p2 = scmp.lt.s32.totalorder %s5649_s15, %s4805_s29 }
 0x183   : > { %v3905_v38 = vpop.f32.mrb[43].mxu1  ;;  %p4808_p3 = scmp.lt.s32.totalorder %s4806_s12, %s4800_s25 }
 0x184   : > { %v3906_v1 = vadd.f32 %v3905_v38, %v3904_v36  ;;  %p4802_p10 = pnand %p4801_p6, %p5720_p9 }
 0x185   : > { %p4809_p4 = por %p4808_p3, %p4807_p2 }
 0x186   : > { %v1253_v2 = vpack.c.bf16 %v3906_v1, %v3903_v0  ;;  %p4803_p12 = pneg %p4802_p10 }
 0x188   : > { %v3907_v40 = vpop.f32.mrb[44].mxu1  ;;  %4244 = vmatprep.mubr.msk.bf16.mxu0 %vm767_vm1, %v1253_v2  ;;  %p4810_p7 = pnand %p4809_p4, %p4803_p12 }
 0x189   : > { %v3908_v41 = vpop.f32.mrb[45].mxu1 }
 0x18a   : > { %v3909_v23 = vadd.f32 %v3908_v41, %v3907_v40  ;;  %v3910_v3 = vpop.f32.mrb[46].mxu1 }
 0x18b   : > { %v3911_v4 = vpop.f32.mrb[47].mxu1 }
 0x18c   : > { %v3912_v27 = vadd.f32 %v3911_v4, %v3910_v3 }
 0x18e   : > { %v1254_v29 = vpack.c.bf16 %v3912_v27, %v3909_v23 }
 0x190   : > { %4245 = vmatmul.mubr.msk.bf16.gmra.mrb[20].mxu0 %vm767_vm1, %v1254_v29  ;;  %v3934_v42 = vpop.f32.mrb[48].mxu1 }
 0x191   : > { %v3935_v5 = vpop.f32.mrb[49].mxu1 }
 0x192   : > { %v3936_v44 = vadd.f32 %v3935_v5, %v3934_v42  ;;  %v3937_v6 = vpop.f32.mrb[50].mxu1 }
 0x193   : > { %v3938_v39 = vpop.f32.mrb[51].mxu1 }
 0x194   : > { %v3939_v43 = vadd.f32 %v3938_v39, %v3937_v6 }
 0x196   : > { %v1459_v45 = vpack.c.bf16 %v3939_v43, %v3936_v44 }
 0x198   : > { %v3940_v46 = vpop.f32.mrb[52].mxu1  ;;  %4250 = vmatprep.mubr.msk.bf16.mxu0 %vm767_vm1, %v1459_v45 }
 0x199   : > { %v3941_v7 = vpop.f32.mrb[53].mxu1 }
 0x19a   : > { %v3942_v47 = vadd.f32 %v3941_v7, %v3940_v46  ;;  %v3943_v48 = vpop.f32.mrb[54].mxu1  ;;  %v3629_v7 = vld [vmem:[%s5699_s2 + $0xa] sm:$0x3] }
 0x19b   : > { %v3944_v8 = vpop.f32.mrb[55].mxu1 }
 0x19c   : > { %v3945_v49 = vadd.f32 %v3944_v8, %v3943_v48 }
 0x19e   : > { %v1460_v50 = vpack.c.bf16 %v3945_v49, %v3942_v47  ;;  %v1686_v49 = vsel %vm780_vm0, %v3629_v7, 0 }
 0x1a0   : > { %4251 = vmatmul.mubr.msk.bf16.vlgmr.msra.gmra.mrb[16].mxu0 %vm767_vm1, %v1460_v50  ;;  %v3946_v9 = vpop.f32.mrb[56].mxu1 }
 0x1a1   : > { %3964 = vmatpush3.bf16.msra.mxu0 %v4760_v10  ;;  %v3947_v51 = vpop.f32.mrb[57].mxu1 }
 0x1a2   : > { %3965 = vmatprep.subr.bf16.mxu0 %v4761_v52  ;;  %v3948_v12 = vadd.f32 %v3947_v51, %v3946_v9  ;;  %v3949_v14 = vpop.f32.mrb[58].mxu1 }
 0x1a3   : > { %v3950_v53 = vpop.f32.mrb[59].mxu1 }
 0x1a4   : > { %v3951_v54 = vadd.f32 %v3950_v53, %v3949_v14 }
 0x1a5   : > { %3966 = vmatpush3.bf16.msra.mxu0 %v4762_v55 }
 0x1a6   : > { %v1461_v56 = vpack.c.bf16 %v3951_v54, %v3948_v12  ;;  %3967 = vmatprep.subr.bf16.mxu0 %v4763_v57 }
 0x1a8   : > { %v3952_v58 = vpop.f32.mrb[60].mxu1  ;;  %4254 = vmatprep.mubr.msk.bf16.mxu0 %vm767_vm1, %v1461_v56 }
 0x1a9   : > { %3968 = vmatpush3.bf16.msra.mxu0 %v4764_v59  ;;  %v3953_v60 = vpop.f32.mrb[61].mxu1 }
 0x1aa   : > { %3969 = vmatprep.subr.bf16.mxu0 %v4765_v61  ;;  %v3954_v62 = vadd.f32 %v3953_v60, %v3952_v58  ;;  %v3955_v63 = vpop.f32.mrb[62].mxu1 }
 0x1ab   : > { %v3956_v11 = vpop.f32.mrb[63].mxu1 }
 0x1ac   : > { %v3957_v13 = vadd.f32 %v3956_v11, %v3955_v63 }
 0x1ad   : > { %3970 = vmatpush3.bf16.msra.mxu0 %v4766_v18 }
 0x1ae   : > { %v1462_v20 = vpack.c.bf16 %v3957_v13, %v3954_v62  ;;  %3971 = vmatprep.subr.bf16.mxu0 %v4767_v21  ;;  %v3642_v13 = vld [vmem:[%s5699_s2 + $0xc] sm:$0x3] }
 0x1b0   : > { %4255 = vmatmul.mubr.msk.bf16.gmra.mrb[20].mxu0 %vm767_vm1, %v1462_v20  ;;  %v4024_v0 = vpop.f32.mrb[64].mxu1 }
 0x1b1   : > { %3972 = vmatpush3.bf16.msra.mxu0 %v4768_v22  ;;  %1634 = vmatprep.mubr.bf16.mxu0 %v4709_v19 }
 0x1b2   : > { %3973 = vmatprep.subr.bf16.mxu0 %v4769_v24 }
 0x1b5   : > { %3974 = vmatpush3.bf16.msra.mxu0 %v4770_v25 }
 0x1b6   : > { %3975 = vmatprep.subr.bf16.mxu0 %v4771_v26 }
 0x1b9   : > { %3976 = vmatpush3.bf16.msra.mxu0 %v5089_v15  ;;  %v4025_v15 = vpop.f32.mrb[65].mxu1 }
 0x1ba   : > { %3977 = vmatprep.subr.bf16.mxu0 %v5093_v16  ;;  %v5285_v36 = vadd.f32 %v4025_v15, %v4024_v0  ;;  %v4027_v16 = vpop.f32.mrb[66].mxu1 }
 0x1bb   : > { %v4028_v37 = vpop.f32.mrb[67].mxu1 }
 0x1bc   : > { %v4030_v1 = vpop.f32.mrb[68].mxu1 }
 0x1bd   : > { %3978 = vmatpush3.bf16.msra.mxu0 %v5099_v17  ;;  %v5287_v17 = vadd.f32 %v4028_v37, %v4027_v16  ;;  %v4031_v2 = vpop.f32.mrb[69].mxu1 }
 0x1be   : > { %v5291_v40 = vadd.f32 %v4031_v2, %v4030_v1  ;;  %v4033_v41 = vpop.f32.mrb[70].mxu1  ;;  %4565 = vmatprep.subr.msk.bf16.mxu0 %vm780_vm0, %v3629_v7 }
 0x1bf   : > { %v1875_v38 = vpack.c.bf16 %v5287_v17, %v5285_v36  ;;  %v4034_v23 = vpop.f32.mrb[71].mxu1  ;;  %v4871_v17 = vmov 0.0  }
 0x1c0   : > { %1635 = vmatmul.mubr.bf16.vlgmr.msra.gmra.mrb[24].mxu0 %v4707_v28  ;;  %v5293_v3 = vadd.f32 %v4034_v23, %v4033_v41  ;;  %v4036_v27 = vpop.f32.mrb[72].mxu1  ;;  %4310 = vmatprep.subr.bf16.mxu1 %v4871_v17 }
 0x1c1   : > { %1642 = vmatprep.mubr.bf16.mxu0 %v4713_v30  ;;  %v4037_v29 = vpop.f32.mrb[73].mxu1  ;;  %4259 = vmatpush3.bf16.msra.mxu0 %v1686_v49 }
 0x1c2   : > { %v1876_v4 = vpack.c.bf16 %v5293_v3, %v5291_v40  ;;  %v4039_v42 = vpop.f32.mrb[74].mxu1  ;;  %v5297_v44 = vadd.f32 %v4037_v29, %v4036_v27  ;;  %4566 = vmatprep.subr.msk.bf16.mxu0 %vm780_vm0, %v3642_v13  ;;  %4318 = vmatprep.mubr.msk.bf16.mxu1 %vm4872_vm2, %v4871_v17  ;;  %v3674_v3 = vld [vmem:[%s5701_s4] ss:$0 sm:$0xff] }
 0x1c3   : > { %v4040_v5 = vpop.f32.mrb[75].mxu1 }
 0x1c4   : > { %v5299_v6 = vadd.f32 %v4040_v5, %v4039_v42 }
 0x1c6   : > { %v1877_v39 = vpack.c.bf16 %v5299_v6, %v5297_v44 }
 0x1c8   : > { %1643 = vmatmul.mubr.bf16.gmra.mrb[28].mxu0 %v4717_v31  ;;  %v4042_v43 = vpop.f32.mrb[76].mxu1 }
 0x1c9   : > { %1650 = vmatprep.mubr.bf16.mxu0 %v4719_v32  ;;  %v4043_v45 = vpop.f32.mrb[77].mxu1 }
 0x1ca   : > { %v4045_v46 = vpop.f32.mrb[78].mxu1  ;;  %v5307_v48 = vadd.f32 %v4043_v45, %v4042_v43 }
 0x1cb   : > { %v4046_v47 = vpop.f32.mrb[79].mxu1 }
 0x1cc   : > { %v5309_v8 = vadd.f32 %v4046_v47, %v4045_v46 }
 0x1ce   : > { %v1878_v50 = vpack.c.bf16 %v5309_v8, %v5307_v48 }
 0x1d0   : > { %1651 = vmatmul.mubr.bf16.gmra.mrb[32].mxu0 %v4724_v33 }
 0x1d1   : > { %1658 = vmatprep.mubr.bf16.mxu0 %v4725_v34 }
 0x1d8   : > { %1659 = vmatmul.mubr.bf16.gmra.mrb[36].mxu0 %v4729_v35 }
 0x206   : > { %v4069_v9 = vpop.f32.mrb[80].mxu1 }
 0x207   : > { %v4070_v10 = vpop.f32.mrb[81].mxu1 }
 0x208   : > { %v4072_v51 = vpop.f32.mrb[82].mxu1  ;;  %v5314_v12 = vadd.f32 %v4070_v10, %v4069_v9 }
 0x209   : > { %v4073_v52 = vpop.f32.mrb[83].mxu1 }
 0x20a   : > { %v5316_v14 = vadd.f32 %v4073_v52, %v4072_v51 }
 0x20c   : > { %v2083_v53 = vpack.c.bf16 %v5316_v14, %v5314_v12 }
 0x20e   : > { %v4075_v54 = vpop.f32.mrb[84].mxu1 }
 0x20f   : > { %v4076_v55 = vpop.f32.mrb[85].mxu1 }
 0x210   : > { %v4078_v56 = vpop.f32.mrb[86].mxu1  ;;  %v5320_v58 = vadd.f32 %v4076_v55, %v4075_v54 }
 0x211   : > { %v4079_v57 = vpop.f32.mrb[87].mxu1 }
 0x212   : > { %v5322_v59 = vadd.f32 %v4079_v57, %v4078_v56 }
 0x214   : > { %v2084_v60 = vpack.c.bf16 %v5322_v59, %v5320_v58 }
 0x225   : > { %v4081_v61 = vpop.f32.mrb[88].mxu1 }
 0x226   : > { %v4082_v62 = vpop.f32.mrb[89].mxu1 }
 0x227   : > { %v4084_v63 = vpop.f32.mrb[90].mxu1  ;;  %v5329_v18 = vadd.f32 %v4082_v62, %v4081_v61 }
 0x228   : > { %v4085_v11 = vpop.f32.mrb[91].mxu1 }
 0x229   : > { %v5331_v19 = vadd.f32 %v4085_v11, %v4084_v63 }
 0x22b   : > { %v2085_v20 = vpack.c.bf16 %v5331_v19, %v5329_v18 }
 0x22d   : > { %v4087_v21 = vpop.f32.mrb[92].mxu1 }
 0x22e   : > { %v4088_v22 = vpop.f32.mrb[93].mxu1 }
 0x22f   : > { %v4090_v24 = vpop.f32.mrb[94].mxu1  ;;  %v5336_v26 = vadd.f32 %v4088_v22, %v4087_v21 }
 0x230   : > { %v4091_v25 = vpop.f32.mrb[95].mxu1 }
 0x231   : > { %v5338_v28 = vadd.f32 %v4091_v25, %v4090_v24 }
 0x233   : > { %v2086_v30 = vpack.c.bf16 %v5338_v28, %v5336_v26 }
 0x235   : > { %v4114_v31 = vpop.f32.mrb[96].mxu1 }
 0x236   : > { %v4115_v32 = vpop.f32.mrb[97].mxu1 }
 0x237   : > { %v4117_v33 = vpop.f32.mrb[98].mxu1  ;;  %v5342_v35 = vadd.f32 %v4115_v32, %v4114_v31 }
 0x238   : > { %v4118_v34 = vpop.f32.mrb[99].mxu1 }
 0x239   : > { %v5344_v0 = vadd.f32 %v4118_v34, %v4117_v33  ;;  %v1894_v34 = vsel %vm780_vm0, %v3642_v13, 0 }
 0x23b   : > { %v2291_v15 = vpack.c.bf16 %v5344_v0, %v5342_v35 }
 0x23d   : > { %v4120_v16 = vpop.f32.mrb[100].mxu1 }
 0x23e   : > { %v4121_v37 = vpop.f32.mrb[101].mxu1 }
 0x23f   : > { %v4123_v1 = vpop.f32.mrb[102].mxu1  ;;  %v5348_v41 = vadd.f32 %v4121_v37, %v4120_v16  ;;  %v3655_v16 = vld [vmem:[%s5699_s2 + $0xe] sm:$0x3] }
 0x240   : > { %v4124_v2 = vpop.f32.mrb[103].mxu1 }
 0x241   : > { %v5350_v23 = vadd.f32 %v4124_v2, %v4123_v1 }
 0x243   : > { %v2292_v27 = vpack.c.bf16 %v5350_v23, %v5348_v41 }
 0x245   : > { %v4126_v29 = vpop.f32.mrb[104].mxu1 }
 0x246   : > { %v4127_v42 = vpop.f32.mrb[105].mxu1 }
 0x247   : > { %v4129_v5 = vpop.f32.mrb[106].mxu1  ;;  %v5354_v45 = vadd.f32 %v4127_v42, %v4126_v29 }
 0x248   : > { %v4130_v43 = vpop.f32.mrb[107].mxu1 }
 0x249   : > { %v4131_v46 = vadd.f32 %v4130_v43, %v4129_v5 }
 0x24b   : > { %v2293_v7 = vpack.c.bf16 %v4131_v46, %v5354_v45 }
 0x24d   : > { %v4132_v47 = vpop.f32.mrb[108].mxu1 }
 0x24e   : > { %v4133_v49 = vpop.f32.mrb[109].mxu1 }
 0x24f   : > { %v4135_v9 = vpop.f32.mrb[110].mxu1  ;;  %v4134_v10 = vadd.f32 %v4133_v49, %v4132_v47 }
 0x250   : > { %v4136_v51 = vpop.f32.mrb[111].mxu1 }
 0x251   : > { %v4137_v52 = vadd.f32 %v4136_v51, %v4135_v9  ;;  %v2102_v51 = vsel %vm780_vm0, %v3655_v16, 0 }
 0x253   : > { %v2294_v54 = vpack.c.bf16 %v4137_v52, %v4134_v10  ;;  %v3668_v52 = vld [vmem:[%s5699_s2 + $0x10] sm:$0x3] }
 0x254   : > { %v2310_v36 = vsel %vm780_vm0, %v3668_v52, 0 }
 0x293   : > { %v3979_v55 = vpop.f32.mrb[24].mxu0 }
 0x294   : > { %v3980_v56 = vpop.f32.mrb[25].mxu0 }
 0x295   : > { %v3981_v57 = vadd.f32 %v3980_v56, %v3979_v55  ;;  %v3982_v61 = vpop.f32.mrb[26].mxu0 }
 0x296   : > { %v3983_v62 = vpop.f32.mrb[27].mxu0 }
 0x297   : > { %v3984_v63 = vadd.f32 %v3983_v62, %v3982_v61 }
 0x299   : > { %v1667_v11 = vpack.c.bf16 %v3984_v63, %v3981_v57 }
 0x29b   : > { %v3985_v21 = vpop.f32.mrb[28].mxu0  ;;  %4260 = vmatprep.mubr.msk.bf16.mxu0 %vm767_vm1, %v1667_v11 }
 0x29c   : > { %v3986_v22 = vpop.f32.mrb[29].mxu0 }
 0x29d   : > { %v3987_v24 = vadd.f32 %v3986_v22, %v3985_v21  ;;  %v3988_v25 = vpop.f32.mrb[30].mxu0  ;;  %v4749_v22 = vld [vmem:[%s5702_s5 + $0x8] sm:$0xff]  }
 0x29e   : > { %v3989_v31 = vpop.f32.mrb[31].mxu0 }
 0x29f   : > { %v3990_v32 = vadd.f32 %v3989_v31, %v3988_v25  ;;  %v4750_v31 = vld [vmem:[%s5702_s5] sm:$0xff]  }
 0x2a1   : > { %v1668_v33 = vpack.c.bf16 %v3990_v32, %v3987_v24  ;;  %v3681_v24 = vld [vmem:[%s5703_s6 + $0x4] sm:$0xf]  ;;  %v2480_v32 = vld [vmem:[%s5703_s6] sm:$0xf] }
 0x2a2   : > { %v2542_v25 = vsel %vm2540_vm4, %v3681_v24, 0 }
 0x2a3   : > { %v3991_v37 = vpop.f32.mrb[32].mxu0  ;;  %4261 = vmatmul.mubr.msk.bf16.vlgmr.msra.gmra.mrb[16].mxu0 %vm767_vm1, %v1668_v33  ;;  %v2589_v33 = vsel %vm2540_vm4, %v2480_v32, 0 }
 0x2a4   : > { %v3992_v1 = vpop.f32.mrb[33].mxu0  ;;  %4269 = vmatpush3.bf16.msra.mxu0 %v1894_v34 }
 0x2a5   : > { %v3993_v2 = vadd.f32 %v3992_v1, %v3991_v37  ;;  %v3994_v29 = vpop.f32.mrb[34].mxu0  ;;  %4567 = vmatprep.subr.msk.bf16.mxu0 %vm780_vm0, %v3655_v16 }
 0x2a6   : > { %v3995_v42 = vpop.f32.mrb[35].mxu0 }
 0x2a7   : > { %v3996_v5 = vadd.f32 %v3995_v42, %v3994_v29  ;;  %v4751_v29 = vld [vmem:[%s5702_s5 + $0x10] sm:$0xff]   ;;  %v4752_v42 = vld [vmem:[%s5702_s5 + $0x18] sm:$0xff]  }
 0x2a9   : > { %v1669_v43 = vpack.c.bf16 %v3996_v5, %v3993_v2  ;;  %v4753_v5 = vld [vmem:[%s5702_s5 + $0x28] sm:$0xff]  }
 0x2ab   : > { %v3997_v45 = vpop.f32.mrb[36].mxu0  ;;  %4264 = vmatprep.mubr.msk.bf16.mxu0 %vm767_vm1, %v1669_v43  ;;  %v4754_v43 = vld [vmem:[%s5702_s5 + $0x30] sm:$0xff]  }
 0x2ac   : > { %v3998_v13 = vpop.f32.mrb[37].mxu0 }
 0x2ad   : > { %v3999_v46 = vadd.f32 %v3998_v13, %v3997_v45  ;;  %v4000_v47 = vpop.f32.mrb[38].mxu0 }
 0x2ae   : > { %v4001_v49 = vpop.f32.mrb[39].mxu0 }
 0x2af   : > { %v4002_v9 = vadd.f32 %v4001_v49, %v4000_v47 }
 0x2b1   : > { %v1670_v10 = vpack.c.bf16 %v4002_v9, %v3999_v46  ;;  %v3688_v9 = vld [vmem:[%s5703_s6 + $0x8] sm:$0xf] }
 0x2b3   : > { %4265 = vmatmul.mubr.msk.bf16.gmra.mrb[20].mxu0 %vm767_vm1, %v1670_v10  ;;  %v2691_v10 = vsel %vm2540_vm4, %v3688_v9, 0 }
 0x2b4   : > { %4270 = vmatprep.mubr.msk.bf16.mxu0 %vm767_vm1, %v1875_v38  ;;  %v3673_v38 = vld [vmem:[%s5700_s3] ss:$0 sm:$0xff] }
 0x2bb   : > { %4271 = vmatmul.mubr.msk.bf16.vlgmr.msra.gmra.mrb[16].mxu0 %vm767_vm1, %v1876_v4 }
 0x2bc   : > { %4274 = vmatprep.mubr.msk.bf16.mxu0 %vm767_vm1, %v1877_v39  ;;  %4279 = vmatpush3.bf16.msra.mxu0 %v2102_v51  ;;  %v4756_v51 = vld [vmem:[%s5702_s5 + $0x38] sm:$0xff]  }
 0x2bd   : > { %4568 = vmatprep.subr.msk.bf16.mxu0 %vm780_vm0, %v3668_v52 }
 0x2c3   : > { %4275 = vmatmul.mubr.msk.bf16.gmra.mrb[20].mxu0 %vm767_vm1, %v1878_v50 }
 0x2c4   : > { %4280 = vmatprep.mubr.msk.bf16.mxu0 %vm767_vm1, %v2083_v53 }
 0x2cb   : > { %4281 = vmatmul.mubr.msk.bf16.vlgmr.msra.gmra.mrb[16].mxu0 %vm767_vm1, %v2084_v60 }
 0x2cc   : > { %4284 = vmatprep.mubr.msk.bf16.mxu0 %vm767_vm1, %v2085_v20  ;;  %4289 = vmatpush3.bf16.msra.mxu0 %v2310_v36 }
 0x2cd   : > { %4298 = vmatprep.subr.bf16.mxu0 %v4871_v17 }
 0x2d3   : > { %4285 = vmatmul.mubr.msk.bf16.gmra.mrb[20].mxu0 %vm767_vm1, %v2086_v30 }
 0x2d4   : > { %4290 = vmatprep.mubr.msk.bf16.mxu0 %vm767_vm1, %v2291_v15 }
 0x2db   : > { %4291 = vmatmul.mubr.msk.bf16.vlgmr.msra.gmra.mrb[16].mxu0 %vm767_vm1, %v2292_v27 }
 0x2dc   : > { %4294 = vmatprep.mubr.msk.bf16.mxu0 %vm767_vm1, %v2293_v7 }
 0x2e3   : > { %4295 = vmatmul.mubr.msk.bf16.gmra.mrb[20].mxu0 %vm767_vm1, %v2294_v54 }
 0x2e4   : > { %4306 = vmatprep.mubr.msk.bf16.mxu0 %vm4872_vm2, %v4871_v17 }
 0x3ae   : > { %v4292_v40 = vpop.f32.mrb[16].mxu0 }
 0x3af   : > { %v2394_v4 = vmul.f32 %v4292_v40, %v3673_v38  ;;  %v2346_v44 = vpop.f32.mrb[17].mxu0 }
 0x3b0   : > { %v2392_v6 = vmul.f32 %v3673_v38, %v2346_v44  ;;  %v4293_v39 = vpop.f32.mrb[18].mxu0 }
 0x3b1   : > { %v2409_v48 = vadd.f32 %v3674_v3, %v2394_v4  ;;  %v2395_v8 = vmul.f32 %v4293_v39, %v3673_v38  ;;  %v2349_v50 = vpop.f32.mrb[19].mxu0  ;;  %v3694_v4 = vld [vmem:[%s5703_s6 + $0xc] sm:$0xf] }
 0x3b2   : > { %v2407_v12 = vadd.f32 %v3674_v3, %v2392_v6  ;;  %v2393_v14 = vmul.f32 %v3673_v38, %v2349_v50 }
 0x3b3   : > { %v2410_v53 = vadd.f32 %v3674_v3, %v2395_v8  ;;  %v2417_v59 = vmax.f32 %v2409_v48, 0.0  ;;  %v2795_v8 = vsel %vm2540_vm4, %v3694_v4, 0 }
 0x3b4   : > { %v2408_v58 = vadd.f32 %v3674_v3, %v2393_v14  ;;  %v2415_v18 = vmax.f32 %v2407_v12, 0.0 }
 0x3b5   : > { %v2418_v60 = vmax.f32 %v2410_v53, 0.0 }
 0x3b6   : > { %v2416_v19 = vmax.f32 %v2408_v58, 0.0  ;;  %v4296_v20 = vpop.f32.mrb[20].mxu0 }
 0x3b7   : > { %v5426_v26 = vpack.c.bf16 %v2418_v60, %v2417_v59  ;;  %v2398_v28 = vmul.f32 %v4296_v20, %v3673_v38  ;;  %v2362_v30 = vpop.f32.mrb[21].mxu0  ;;  %v4755_v59 = vld [vmem:[%s5702_s5 + $0x20] sm:$0xff]   ;;  %v3700_v60 = vld [vmem:[%s5703_s6 + $0x10] sm:$0xf] }
 0x3b8   : > { %v5428_v35 = vpack.c.bf16 %v2416_v19, %v2415_v18  ;;  %v2396_v0 = vmul.f32 %v3673_v38, %v2362_v30  ;;  %v4297_v15 = vpop.f32.mrb[22].mxu0  ;;  %v2899_v18 = vsel %vm2540_vm4, %v3700_v60, 0 }
 0x3b9   : > { %v2413_v41 = vadd.f32 %v3674_v3, %v2398_v28  ;;  %v2399_v23 = vmul.f32 %v4297_v15, %v3673_v38  ;;  %v2365_v27 = vpop.f32.mrb[23].mxu0 }
 0x3ba   : > { %v2411_v7 = vadd.f32 %v3674_v3, %v2396_v0  ;;  %v2397_v54 = vmul.f32 %v3673_v38, %v2365_v27  ;;  %4299 = vmatpush3.bf16.msra.mxu0 %v5428_v35  ;;  %4311 = vmatpush3.bf16.msra.mxu1 %v5428_v35 }
 0x3bb   : > { %v2414_v55 = vadd.f32 %v3674_v3, %v2399_v23  ;;  %4300 = vmatprep.subr.bf16.mxu0 %v4871_v17  ;;  %4312 = vmatprep.subr.bf16.mxu1 %v4871_v17  ;;  %v2421_v57 = vmax.f32 %v2413_v41, 0.0 }
 0x3bc   : > { %v2412_v56 = vadd.f32 %v3674_v3, %v2397_v54  ;;  %v2419_v62 = vmax.f32 %v2411_v7, 0.0 }
 0x3bd   : > { %v2422_v61 = vmax.f32 %v2414_v55, 0.0 }
 0x3be   : > { %v2420_v63 = vmax.f32 %v2412_v56, 0.0  ;;  %4301 = vmatpush3.bf16.msra.mxu0 %v5426_v26  ;;  %4313 = vmatpush3.bf16.msra.mxu1 %v5426_v26 }
 0x3bf   : > { %v5436_v11 = vpack.c.bf16 %v2422_v61, %v2421_v57  ;;  %4302 = vmatprep.subr.bf16.mxu0 %v4871_v17  ;;  %4314 = vmatprep.subr.bf16.mxu1 %v4871_v17 }
 0x3c0   : > { %v5440_v21 = vpack.c.bf16 %v2420_v63, %v2419_v62  ;;  %v3706_v63 = vld [vmem:[%s5703_s6 + $0x14] sm:$0xf] }
 0x3c2   : > { %4303 = vmatpush3.bf16.msra.mxu0 %v5440_v21  ;;  %4315 = vmatpush3.bf16.msra.mxu1 %v5440_v21 }
 0x3c3   : > { %4304 = vmatprep.subr.bf16.mxu0 %v4871_v17  ;;  %4316 = vmatprep.subr.bf16.mxu1 %v4871_v17 }
 0x3c6   : > { %4305 = vmatpush3.bf16.msra.mxu0 %v5436_v11  ;;  %4317 = vmatpush3.bf16.msra.mxu1 %v5436_v11 }
 0x3c7   : > { %4322 = vmatprep.subr.bf16.mxu1 %v4871_v17  ;;  %4328 = vmatprep.subr.bf16.mxu0 %v4871_v17 }
 0x3c9   : > { %4319 = vmatmul.mubr.msk.bf16.vlgmr.msra.gmra.mrb[112].mxu1 %vm2434_vm3, %v4749_v22  ;;  %4307 = vmatmul.mubr.msk.bf16.vlgmr.msra.gmra.mrb[40].mxu0 %vm2434_vm3, %v4750_v31  ;;  %v3003_v31 = vsel %vm2540_vm4, %v3706_v63, 0 }
 0x3ca   : > { %4324 = vmatprep.mubr.msk.bf16.mxu1 %vm4872_vm2, %v4871_v17  ;;  %4323 = vmatpush3.bf16.msra.mxu1 %v2542_v25 }
 0x3cb   : > { %4334 = vmatprep.subr.bf16.mxu1 %v4871_v17  ;;  %4330 = vmatprep.mubr.msk.bf16.mxu0 %vm4872_vm2, %v4871_v17 }
 0x3cc   : > { %4329 = vmatpush3.bf16.msra.mxu0 %v2589_v33  ;;  %v3712_v33 = vld [vmem:[%s5703_s6 + $0x18] sm:$0xf] }
 0x3cd   : > { %4346 = vmatprep.subr.bf16.mxu0 %v4871_v17 }
 0x49c   : > { %v2526_v34 = vpop.f32.mrb[112].mxu1  ;;  %v2472_v45 = vpop.f32.mrb[40].mxu0 }
 0x49d   : > { %v4320_v16 = vpop.f32.mrb[113].mxu1  ;;  %v4308_v13 = vpop.f32.mrb[41].mxu0 }
 0x49e   : > { %v2529_v37 = vpop.f32.mrb[114].mxu1  ;;  %v2475_v46 = vpop.f32.mrb[42].mxu0  ;;  %v3718_v16 = vld [vmem:[%s5703_s6 + $0x1c] sm:$0xf] }
 0x49f   : > { %v2533_v1 = vpack.c.bf16 %v2529_v37, %v2526_v34  ;;  %v4321_v2 = vpop.f32.mrb[115].mxu1  ;;  %v2479_v47 = vpack.c.bf16 %v2475_v46, %v2472_v45  ;;  %v4309_v49 = vpop.f32.mrb[43].mxu0  ;;  %v3107_v34 = vsel %vm2540_vm4, %v3712_v33, 0  ;;  %v3211_v37 = vsel %vm2540_vm4, %v3718_v16, 0  ;;  %v3727_v46 = vld [vmem:[%s5705_s8] ss:$0 sm:$0xff] }
 0x4a1   : > { %4325 = vmatmul.mubr.msk.bf16.vlgmr.msra.gmra.mrb[116].mxu1 %vm2536_vm5, %v2533_v1  ;;  %4331 = vmatmul.mubr.msk.bf16.vlgmr.msra.gmra.mrb[44].mxu0 %vm2536_vm5, %v2479_v47  ;;  %v4757_v1 = vld [vmem:[%s5702_s5 + $0x40] sm:$0xff]  }
 0x4a2   : > { %4335 = vmatpush3.bf16.msra.mxu1 %v5428_v35  ;;  %4342 = vmatprep.mubr.msk.bf16.mxu1 %vm4872_vm2, %v4871_v17 }
 0x4a3   : > { %4336 = vmatprep.subr.bf16.mxu1 %v4871_v17  ;;  %4348 = vmatprep.mubr.msk.bf16.mxu0 %vm4872_vm2, %v4871_v17 }
 0x4a4   : > { %4347 = vmatpush3.bf16.msra.mxu0 %v2691_v10 }
 0x4a5   : > { %4364 = vmatprep.subr.bf16.mxu0 %v4871_v17 }
 0x4a6   : > { %4337 = vmatpush3.bf16.msra.mxu1 %v5426_v26 }
 0x4a7   : > { %4338 = vmatprep.subr.bf16.mxu1 %v4871_v17 }
 0x4aa   : > { %4339 = vmatpush3.bf16.msra.mxu1 %v5440_v21 }
 0x4ab   : > { %4340 = vmatprep.subr.bf16.mxu1 %v4871_v17 }
 0x4ae   : > { %4341 = vmatpush3.bf16.msra.mxu1 %v5436_v11 }
 0x4af   : > { %4352 = vmatprep.subr.bf16.mxu1 %v4871_v17 }
 0x4b1   : > { %4343 = vmatmul.mubr.msk.bf16.vlgmr.msra.gmra.mrb[120].mxu1 %vm2434_vm3, %v4751_v29 }
 0x4b2   : > { %4353 = vmatpush3.bf16.msra.mxu1 %v5428_v35  ;;  %4360 = vmatprep.mubr.msk.bf16.mxu1 %vm4872_vm2, %v4871_v17 }
 0x4b3   : > { %4354 = vmatprep.subr.bf16.mxu1 %v4871_v17 }
 0x4b6   : > { %4355 = vmatpush3.bf16.msra.mxu1 %v5426_v26 }
 0x4b7   : > { %4356 = vmatprep.subr.bf16.mxu1 %v4871_v17 }
 0x4ba   : > { %4357 = vmatpush3.bf16.msra.mxu1 %v5440_v21 }
 0x4bb   : > { %4358 = vmatprep.subr.bf16.mxu1 %v4871_v17 }
 0x4be   : > { %4359 = vmatpush3.bf16.msra.mxu1 %v5436_v11 }
 0x4bf   : > { %4388 = vmatprep.subr.bf16.mxu1 %v4871_v17 }
 0x4c1   : > { %4361 = vmatmul.mubr.msk.bf16.vlgmr.msra.gmra.mrb[124].mxu1 %vm2434_vm3, %v4752_v42 }
 0x4c2   : > { %4389 = vmatpush3.bf16.msra.mxu1 %v5428_v35  ;;  %4396 = vmatprep.mubr.msk.bf16.mxu1 %vm4872_vm2, %v4871_v17 }
 0x4c3   : > { %4390 = vmatprep.subr.bf16.mxu1 %v4871_v17 }
 0x4c6   : > { %4391 = vmatpush3.bf16.msra.mxu1 %v5426_v26 }
 0x4c7   : > { %4392 = vmatprep.subr.bf16.mxu1 %v4871_v17 }
 0x4ca   : > { %4393 = vmatpush3.bf16.msra.mxu1 %v5440_v21 }
 0x4cb   : > { %4394 = vmatprep.subr.bf16.mxu1 %v4871_v17 }
 0x4ce   : > { %4395 = vmatpush3.bf16.msra.mxu1 %v5436_v11 }
 0x4cf   : > { %4406 = vmatprep.subr.bf16.mxu1 %v4871_v17 }
 0x4d1   : > { %4397 = vmatmul.mubr.msk.bf16.vlgmr.msra.gmra.mrb[128].mxu1 %vm2434_vm3, %v4753_v5 }
 0x4d2   : > { %4407 = vmatpush3.bf16.msra.mxu1 %v5428_v35  ;;  %4414 = vmatprep.mubr.msk.bf16.mxu1 %vm4872_vm2, %v4871_v17 }
 0x4d3   : > { %4408 = vmatprep.subr.bf16.mxu1 %v4871_v17 }
 0x4d6   : > { %4409 = vmatpush3.bf16.msra.mxu1 %v5426_v26 }
 0x4d7   : > { %4410 = vmatprep.subr.bf16.mxu1 %v4871_v17 }
 0x4da   : > { %4411 = vmatpush3.bf16.msra.mxu1 %v5440_v21 }
 0x4db   : > { %4412 = vmatprep.subr.bf16.mxu1 %v4871_v17 }
 0x4de   : > { %4413 = vmatpush3.bf16.msra.mxu1 %v5436_v11 }
 0x4df   : > { %4424 = vmatprep.subr.bf16.mxu1 %v4871_v17 }
 0x4e1   : > { %4415 = vmatmul.mubr.msk.bf16.vlgmr.msra.gmra.mrb[132].mxu1 %vm2434_vm3, %v4754_v43  ;;  %v3726_v43 = vld [vmem:[%s5704_s7] ss:$0 sm:$0xff] }
 0x4e2   : > { %4425 = vmatpush3.bf16.msra.mxu1 %v5428_v35  ;;  %4432 = vmatprep.mubr.msk.bf16.mxu1 %vm4872_vm2, %v4871_v17 }
 0x4e3   : > { %4426 = vmatprep.subr.bf16.mxu1 %v4871_v17 }
 0x4e6   : > { %4427 = vmatpush3.bf16.msra.mxu1 %v5426_v26 }
 0x4e7   : > { %4428 = vmatprep.subr.bf16.mxu1 %v4871_v17 }
 0x4ea   : > { %4429 = vmatpush3.bf16.msra.mxu1 %v5440_v21 }
 0x4eb   : > { %4430 = vmatprep.subr.bf16.mxu1 %v4871_v17 }
 0x4ee   : > { %4431 = vmatpush3.bf16.msra.mxu1 %v5436_v11 }
 0x4ef   : > { %4460 = vmatprep.subr.bf16.mxu1 %v4871_v17 }
 0x4f1   : > { %4433 = vmatmul.mubr.msk.bf16.vlgmr.msra.gmra.mrb[136].mxu1 %vm2434_vm3, %v4756_v51 }
 0x4f2   : > { %4462 = vmatprep.mubr.msk.bf16.mxu1 %vm4872_vm2, %v4871_v17 }
 0x574   : > { %v5553_v52 = vpop.f32.mrb[116].mxu1 }
 0x575   : > { %v4326_v36 = vpop.f32.mrb[117].mxu1 }
 0x576   : > { %v5555_v38 = vpop.f32.mrb[118].mxu1 }
 0x577   : > { %v4327_v40 = vpop.f32.mrb[119].mxu1 }
 0x584   : > { %v2677_v3 = vpop.f32.mrb[120].mxu1 }
 0x585   : > { %v4344_v44 = vpop.f32.mrb[121].mxu1 }
 0x586   : > { %v2680_v6 = vpop.f32.mrb[122].mxu1 }
 0x587   : > { %v2684_v39 = vpack.c.bf16 %v2680_v6, %v2677_v3  ;;  %v4345_v48 = vpop.f32.mrb[123].mxu1 }
 0x589   : > { %4349 = vmatmul.mubr.msk.bf16.vlgmr.msra.gmra.mrb[44].mxu0 %vm2536_vm5, %v2684_v39 }
 0x58a   : > { %4365 = vmatpush3.bf16.msra.mxu0 %v2795_v8  ;;  %4366 = vmatprep.mubr.msk.bf16.mxu0 %vm4872_vm2, %v4871_v17 }
 0x58b   : > { %4370 = vmatprep.subr.bf16.mxu0 %v4871_v17 }
 0x594   : > { %v2781_v50 = vpop.f32.mrb[124].mxu1 }
 0x595   : > { %v4362_v12 = vpop.f32.mrb[125].mxu1 }
 0x596   : > { %v2784_v14 = vpop.f32.mrb[126].mxu1 }
 0x597   : > { %v2788_v53 = vpack.c.bf16 %v2784_v14, %v2781_v50  ;;  %v4363_v58 = vpop.f32.mrb[127].mxu1 }
 0x599   : > { %4367 = vmatmul.mubr.msk.bf16.vlgmr.msra.gmra.mrb[44].mxu0 %vm2536_vm5, %v2788_v53 }
 0x59a   : > { %4371 = vmatpush3.bf16.msra.mxu0 %v5428_v35  ;;  %4378 = vmatprep.mubr.msk.bf16.mxu0 %vm4872_vm2, %v4871_v17 }
 0x59b   : > { %4372 = vmatprep.subr.bf16.mxu0 %v4871_v17 }
 0x59e   : > { %4373 = vmatpush3.bf16.msra.mxu0 %v5426_v26 }
 0x59f   : > { %4374 = vmatprep.subr.bf16.mxu0 %v4871_v17 }
 0x5a2   : > { %4375 = vmatpush3.bf16.msra.mxu0 %v5440_v21 }
 0x5a3   : > { %4376 = vmatprep.subr.bf16.mxu0 %v4871_v17 }
 0x5a4   : > { %v2989_v19 = vpop.f32.mrb[128].mxu1 }
 0x5a5   : > { %v4398_v20 = vpop.f32.mrb[129].mxu1 }
 0x5a6   : > { %4377 = vmatpush3.bf16.msra.mxu0 %v5436_v11  ;;  %v2992_v28 = vpop.f32.mrb[130].mxu1 }
 0x5a7   : > { %4382 = vmatprep.subr.bf16.mxu0 %v4871_v17  ;;  %v2996_v30 = vpack.c.bf16 %v2992_v28, %v2989_v19  ;;  %v4399_v0 = vpop.f32.mrb[131].mxu1 }
 0x5a9   : > { %4379 = vmatmul.mubr.msk.bf16.vlgmr.msra.gmra.mrb[48].mxu0 %vm2434_vm3, %v4755_v59 }
 0x5aa   : > { %4384 = vmatprep.mubr.msk.bf16.mxu0 %vm4872_vm2, %v4871_v17  ;;  %4383 = vmatpush3.bf16.msra.mxu0 %v2899_v18 }
 0x5ab   : > { %4400 = vmatprep.subr.bf16.mxu0 %v4871_v17 }
 0x5b4   : > { %v3093_v15 = vpop.f32.mrb[132].mxu1 }
 0x5b5   : > { %v4416_v41 = vpop.f32.mrb[133].mxu1 }
 0x5b6   : > { %v3096_v23 = vpop.f32.mrb[134].mxu1 }
 0x5b7   : > { %v3100_v27 = vpack.c.bf16 %v3096_v23, %v3093_v15  ;;  %v4417_v7 = vpop.f32.mrb[135].mxu1 }
 0x5c4   : > { %v3197_v54 = vpop.f32.mrb[136].mxu1 }
 0x5c5   : > { %v4434_v55 = vpop.f32.mrb[137].mxu1 }
 0x5c6   : > { %v3200_v56 = vpop.f32.mrb[138].mxu1 }
 0x5c7   : > { %v3204_v57 = vpack.c.bf16 %v3200_v56, %v3197_v54  ;;  %v4435_v61 = vpop.f32.mrb[139].mxu1 }
 0x67c   : > { %v2885_v62 = vpop.f32.mrb[48].mxu0 }
 0x67d   : > { %v4380_v22 = vpop.f32.mrb[49].mxu0 }
 0x67e   : > { %v2888_v24 = vpop.f32.mrb[50].mxu0 }
 0x67f   : > { %v2892_v25 = vpack.c.bf16 %v2888_v24, %v2885_v62  ;;  %v4381_v32 = vpop.f32.mrb[51].mxu0 }
 0x681   : > { %4385 = vmatmul.mubr.msk.bf16.vlgmr.msra.gmra.mrb[44].mxu0 %vm2536_vm5, %v2892_v25 }
 0x682   : > { %4401 = vmatpush3.bf16.msra.mxu0 %v3003_v31  ;;  %4402 = vmatprep.mubr.msk.bf16.mxu0 %vm4872_vm2, %v4871_v17 }
 0x683   : > { %4418 = vmatprep.subr.bf16.mxu0 %v4871_v17 }
 0x68d   : > { %4403 = vmatmul.mubr.msk.bf16.vlgmr.msra.gmra.mrb[44].mxu0 %vm2536_vm5, %v2996_v30 }
 0x68e   : > { %4419 = vmatpush3.bf16.msra.mxu0 %v3107_v34  ;;  %4420 = vmatprep.mubr.msk.bf16.mxu0 %vm4872_vm2, %v4871_v17 }
 0x68f   : > { %4436 = vmatprep.subr.bf16.mxu0 %v4871_v17 }
 0x699   : > { %4421 = vmatmul.mubr.msk.bf16.vlgmr.msra.gmra.mrb[44].mxu0 %vm2536_vm5, %v3100_v27 }
 0x69a   : > { %4437 = vmatpush3.bf16.msra.mxu0 %v3211_v37  ;;  %4438 = vmatprep.mubr.msk.bf16.mxu0 %vm4872_vm2, %v4871_v17 }
 0x69b   : > { %4442 = vmatprep.subr.bf16.mxu0 %v4871_v17 }
 0x6a5   : > { %4439 = vmatmul.mubr.msk.bf16.vlgmr.msra.gmra.mrb[44].mxu0 %vm2536_vm5, %v3204_v57 }
 0x6a6   : > { %4443 = vmatpush3.bf16.msra.mxu0 %v5428_v35  ;;  %4450 = vmatprep.mubr.msk.bf16.mxu0 %vm4872_vm2, %v4871_v17 }
 0x6a7   : > { %4444 = vmatprep.subr.bf16.mxu0 %v4871_v17 }
 0x6aa   : > { %4445 = vmatpush3.bf16.msra.mxu0 %v5426_v26  ;;  %v3724_v26 = vld [vmem:[%s5703_s6 + $0x20] sm:$0xf] }
 0x6ab   : > { %4446 = vmatprep.subr.bf16.mxu0 %v4871_v17  ;;  %v3315_v35 = vsel %vm2540_vm4, %v3724_v26, 0 }
 0x6ae   : > { %4447 = vmatpush3.bf16.msra.mxu0 %v5440_v21 }
 0x6af   : > { %4448 = vmatprep.subr.bf16.mxu0 %v4871_v17 }
 0x6b2   : > { %4449 = vmatpush3.bf16.msra.mxu0 %v5436_v11  ;;  %v4758_v11 = vld [vmem:[%s5706_s9] sm:$0xff]  }
 0x6b3   : > { %4454 = vmatprep.subr.bf16.mxu0 %v4871_v17  ;;  %4461 = vmatpush3.bf16.msra.mxu1 %v4758_v11 }
 0x6b5   : > { %4451 = vmatmul.mubr.msk.bf16.vlgmr.msra.gmra.mrb[52].mxu0 %vm2434_vm3, %v4757_v1 }
 0x6b6   : > { %4456 = vmatprep.mubr.msk.bf16.mxu0 %vm4872_vm2, %v4871_v17  ;;  %4455 = vmatpush3.bf16.msra.mxu0 %v3315_v35 }
 0x788   : > { %v3301_v21 = vpop.f32.mrb[52].mxu0 }
 0x789   : > { %v4452_v2 = vpop.f32.mrb[53].mxu0 }
 0x78a   : > { %v3304_v29 = vpop.f32.mrb[54].mxu0 }
 0x78b   : > { %v3308_v42 = vpack.c.bf16 %v3304_v29, %v3301_v21  ;;  %v4453_v5 = vpop.f32.mrb[55].mxu0 }
 0x78d   : > { %4457 = vmatmul.mubr.msk.bf16.vlgmr.msra.gmra.mrb[44].mxu0 %vm2536_vm5, %v3308_v42 }
 0x860   : > { %v3351_v17 = vpop.f32.mrb[44].mxu0 }
 0x861   : > { %v4466_v45 = vadd.f32 %v3351_v17, %v5553_v52  ;;  %v4458_v13 = vpop.f32.mrb[45].mxu0  ;;  %v3728_v52 = vld [vmem:[%s5707_s10] ss:$0 sm:$0xff] }
 0x862   : > { %v3354_v47 = vpop.f32.mrb[46].mxu0 }
 0x863   : > { %v3367_v49 = vmul.f32 %v4466_v45, %v3726_v43  ;;  %v4467_v9 = vadd.f32 %v3354_v47, %v5555_v38  ;;  %v4459_v10 = vpop.f32.mrb[47].mxu0 }
 0x865   : > { %v3376_v51 = vadd.f32 %v3727_v46, %v3367_v49  ;;  %v3368_v36 = vmul.f32 %v4467_v9, %v3726_v43 }
 0x867   : > { %v3377_v40 = vadd.f32 %v3727_v46, %v3368_v36  ;;  %v3378_v3 = vmax.f32 %v3376_v51, 0.0 }
 0x869   : > { %v3379_v4 = vmax.f32 %v3377_v40, 0.0 }
 0x86b   : > { %v3380_v44 = vpack.c.bf16 %v3379_v4, %v3378_v3 }
 0x86d   : > { %4463 = vmatmul.mubr.msk.bf16.vlgmr.msra.gmra.mrb[140].mxu1 %vm3396_vm6, %v3380_v44 }
 0x940   : > { %v3434_v38 = vpop.f32.mrb[140].mxu1 }
 0x941   : > { %v3435_v6 = vadd.f32 %v3728_v52, %v3434_v38  ;;  %v4464_v39 = vpop.f32.mrb[141].mxu1 }
 0x942   : > { %v3437_v48 = vpop.f32.mrb[142].mxu1 }
 0x943   : > { %3442 = vst.msk [vmem:[%s394_s14] sm:$0xff] %vm3441_vm7, %v3435_v6  ;;  %v3438_v8 = vadd.f32 %v3728_v52, %v3437_v48  ;;  %v4465_v50 = vpop.f32.mrb[143].mxu1 }
 0x945   : > { %3443 = vst.msk [vmem:[%s394_s14 + $0x8] sm:$0xff] %vm3441_vm7, %v3438_v8 }
 0x946   : > { %4813 = shalt.err (!%p4810_p7)
}
 0x947   : > { %s4814_s13 = scalar_lea.hbm %s5654_s16, 256  ;;  %s4818_s24 = scalar_lea.hbm %s5708_s11, 512 }
 0x948   : > { %p4815_p8 = scmp.ne.s32.totalorder %s5654_s16, %s4814_s13  ;;  %p4819_p1 = scmp.lt.u32.totalorder %s5654_s16, %s5708_s11 }
 0x949   : > { %p4820_p0 = scmp.lt.u32.totalorder %s4818_s24, %s4814_s13  ;;  %p4822_p6 = scmp.lt.u32.totalorder %s4814_s13, %s5654_s16 }
 0x94a   : > { %p4816_p11 = pnand %p4815_p8, %p5720_p9 }
 0x94b   : > { %p4821_p5 = por %p4820_p0, %p4819_p1 }
 0x94c   : > { %p4817_p13 = pneg %p4816_p11 }
 0x94d   : > { %p4823_p10 = por %p4822_p6, %p4821_p5 }
 0x94f   : > { %p4824_p12 = pnand %p4823_p10, %p4817_p13 }
 0x951   : > { %4827 = shalt.err (!%p4824_p12)
}
 0x952   : > { %s4874_s25 = smov 128   ;;  %s4875_s29 = smov 8  }
 0x953   : > { %4573 = dma.vmem_to_hbm [thread:$0]  (%p5720_p9), %s5649_s15, 256, %s5654_s16, %s5656_s21, %s4874_s25, %s4874_s25, %s4875_s29  }
 0x954 PF: > { %p4585_p2 = scmp.ge.s32.totalorder %s4866_s20, 2  ;;  %s3473_s12 = sand.u32 1, %s4854_s17  }
 0x955   : > { %p5721_p3 = scmp.ne.s32.totalorder %s5714_s28, 0  ;;  %s3474_s13 = scalar_lea.sflag [#allocation4], %s3473_s12 }
 0x957   : > { %p4580_p4 = pnand %p4585_p2, %p5721_p3 }
 0x959   : > { %4849 = dma.done.wait (!%p4580_p4), %s3474_s13, 256  }
 0x95a   : > { %4851 = vsyncadd (!%p4580_p4), %s3474_s13, 4294967040  ;;  %s5722_s14 = sld [smem:[#allocation8_spill]]  ;;  %p22_p7 = scmp.ge.s32.totalorder %s4961_s23, 4  }
 0x95b   : > { %s5723_s17 = smov %s4858_s18  ;;  %s5724_s18 = smov %s4862_s19 }
 0x95c   : > { %s5726_s20 = smov %s4961_s23  ;;  %24 = sbr.rel (!%p22_p7) target bundleno = 4 (0x4), region = 136 }
 0x960   : > { %s5725_s19 = smov %s5722_s14 }
 0x963   :  { %3479 = vsyncpa [#allocation3], 1 }
 0x964   :  { %3481 = vsyncpa [#allocation3 + $0x1], 1 }
 0x965   :  { %3482 = vsyncpa [#allocation4], 1 }
 0x966   :  { %3484 = vsyncpa [#allocation4 + $0x1], 1 }

</bundles_post_ra>
